<compile_context>
chip_gen: v7x
topology: tpu7x:2x2x1
jax: 0.10.0
libtpu: 0.0.40
codegen_flags: <defaults>
</compile_context>

<pallas_src>
import math

import numpy as np
import jax
import jax.numpy as jnp
from jax.experimental import pallas as pl
from jax.experimental.pallas import tpu as pltpu

# ----------------------------- small config --------------------------------
VOCAB = 256            # num_tokens       (orig 50432)
DIM = 32               # dim              (orig 2560)
DEPTH = 2              # depth            (orig 32)
HEADS = 4              # heads            (orig 24)
DIM_HEAD = 8           # dim_head         (orig 128)
KV_HEADS = 2           # attn_kv_heads    (orig 2)
ALIBI_HEADS = 2        # alibi_num_heads  (orig 12 = heads/2)
FFN_MULT = 4
QK_NORM_SCALE = 10.0   # x-transformers softmax scale when qk_norm=True
XPOS_SCALE_BASE = 512.0
MASK_NEG = -1e30       # finite; the score path stays f32 (no -inf/NaN hazard)

QD = HEADS * DIM_HEAD          # 32   packed q lane width
KD = KV_HEADS * DIM_HEAD       # 16   packed k/v lane width
QKVD = QD + 2 * KD             # 64   fused qkv projection width
GROUP = HEADS // KV_HEADS      # GQA group size
HID = DIM * FFN_MULT           # 128  FFN hidden width
SUBLANE = 8


def _round_up(x, m):
    return (x + m - 1) // m * m


# ------------------------- baked compile-time constants ----------------------
def _alibi_slopes(heads, alibi_num_heads):
    """Python-float ALiBi slopes (pure function of the static config)."""
    def pow2_slopes(n):
        start = 2.0 ** (-(2.0 ** -(math.log2(n) - 3)))
        return [start * (start ** i) for i in range(n)]

    n = alibi_num_heads
    if math.log2(n).is_integer():
        slopes = pow2_slopes(n)
    else:
        closest = 2 ** math.floor(math.log2(n))
        slopes = pow2_slopes(closest) + pow2_slopes(2 * closest)[0::2][: n - closest]
    return slopes + [0.0] * (heads - alibi_num_heads)


ALIBI_SLOPES = _alibi_slopes(HEADS, ALIBI_HEADS)


def _static_tables(S):
    """Rotary-xpos cos/sin tables (xpos scale folded in) for the lane-packed
    [*, n_heads*Dh] layout, plus the rotate_half signed-permutation matrices
    and per-head sum-of-squares (block-diagonal ones) matrices.

    All are numpy -> embedded as compile-time constants of the traced program.
    """
    dh = DIM_HEAD
    inv_freq = 1.0 / (10000.0 ** (np.arange(0, dh, 2, dtype=np.float64) / dh))
    t = np.arange(S, dtype=np.float64)
    freqs = np.einsum("i,j->ij", t, inv_freq)                 # [S, dh/2]
    freqs = np.concatenate([freqs, freqs], axis=-1)           # [S, dh]
    base = (np.arange(0, dh, 2, dtype=np.float64) + 0.4 * dh) / (1.4 * dh)
    power = (t - S // 2) / XPOS_SCALE_BASE
    scale = base[None, :] ** power[:, None]                   # [S, dh/2]
    scale = np.concatenate([scale, scale], axis=-1)           # [S, dh]
    cos, sin = np.cos(freqs), np.sin(freqs)

    cs_q = np.tile(cos * scale, (1, HEADS)).astype(np.float32)      # q: xpos scale
    sn_q = np.tile(sin * scale, (1, HEADS)).astype(np.float32)
    cs_k = np.tile(cos / scale, (1, KV_HEADS)).astype(np.float32)   # k: 1/xpos scale
    sn_k = np.tile(sin / scale, (1, KV_HEADS)).astype(np.float32)

    def rot_half_mat(n_heads):
        # rotate_half(x) == x @ P per head block (swap halves, negate first half)
        n = n_heads * dh
        P = np.zeros((n, n), np.float32)
        for h in range(n_heads):
            for d in range(dh // 2):
                P[h * dh + d + dh // 2, h * dh + d] = -1.0
                P[h * dh + d, h * dh + d + dh // 2] = 1.0
        return P

    def head_sum_mat(n_heads):
        # (x*x) @ G broadcasts each head's sum-of-squares to that head's lanes
        n = n_heads * dh
        G = np.zeros((n, n), np.float32)
        for h in range(n_heads):
            G[h * dh:(h + 1) * dh, h * dh:(h + 1) * dh] = 1.0
        return G

    return tuple(
        jnp.asarray(a)
        for a in (cs_q, sn_q, cs_k, sn_k,
                  rot_half_mat(HEADS), rot_half_mat(KV_HEADS),
                  head_sum_mat(HEADS), head_sum_mat(KV_HEADS))
    )


# ------------------------------ fused stack kernel ---------------------------
def _ln_rows(x, g, b, eps=1e-5):
    mu = jnp.mean(x, axis=-1, keepdims=True)
    var = jnp.mean((x - mu) ** 2, axis=-1, keepdims=True)
    return (x - mu) * jax.lax.rsqrt(var + eps) * g + b


def _gemini_stack_kernel(tok_ref, emb_ref, csq_ref, snq_ref, csk_ref, snk_ref,
                         rpq_ref, rpk_ref, gq_ref, gk_ref,
                         ln_ref, wqkv_ref, qs_ref, ks_ref, wo_ref,
                         w1_ref, b1_ref, w2_ref, b2_ref,
                         lnf_ref, wlog_ref, logits_ref):
    """One grid step = one batch element through the whole transformer stack.

    tok_ref   : [S, 1]             int32 token ids
    emb_ref   : [VOCAB, D]         f32 token embedding
    cs*/sn*   : [S, QD]/[S, KD]    f32 rotary cos/sin with xpos scale folded
    rp*/g*    : packed-lane rotate_half permutation / head-sum matrices
    ln_ref    : [DEPTH, 4, D]      (ln1_g, ln1_b, ln2_g, ln2_b)
    wqkv_ref  : [DEPTH, D, QKVD]   bf16 fused q|k|v projection
    qs/ks_ref : [DEPTH, 1, QD/KD]  learned qk-norm scales (softmax scale folded)
    wo_ref    : [DEPTH, QD, D]     bf16 output projection (heads packed on K)
    w1/w2     : bf16 FFN weights, b1/b2 f32 biases
    lnf_ref   : [2, D]             final LN
    wlog_ref  : [D, VOCAB]         bf16 logits projection
    logits_ref: [S, VOCAB]         f32, lane-dense single-shot store
    """
    S = tok_ref.shape[0]

    # ---- token embedding: gather-free one-hot matmul (stays on the MXU) -----
    onehot = (jax.lax.broadcasted_iota(jnp.int32, (S, VOCAB), 1)
              == tok_ref[...]).astype(jnp.float32)
    x = jnp.dot(onehot, emb_ref[...], preferred_element_type=jnp.float32)   # [S, D]

    # ---- ALiBi + causal bias generated in-kernel (no [H,S,S] HBM tensor) ----
    row = jax.lax.broadcasted_iota(jnp.int32, (S, S), 0)
    col = jax.lax.broadcasted_iota(jnp.int32, (S, S), 1)
    causal = col <= row
    dist = -jnp.abs(col - row).astype(jnp.float32)

    csq, snq = csq_ref[...], snq_ref[...]
    csk, snk = csk_ref[...], snk_ref[...]
    rpq, rpk = rpq_ref[...], rpk_ref[...]
    gq, gk = gq_ref[...], gk_ref[...]

    for l in range(DEPTH):                               # DEPTH=2: static unroll
        lnp = ln_ref[l]                                  # [4, D]

        # ------------------ attention block (pre-norm) -----------------------
        xn = _ln_rows(x, lnp[0:1, :], lnp[1:2, :])
        qkv = jnp.dot(xn.astype(jnp.bfloat16), wqkv_ref[l],
                      preferred_element_type=jnp.float32)          # [S, QKVD]
        q = qkv[:, :QD]
        k = qkv[:, QD:QD + KD]
        v = qkv[:, QD + KD:]

        # qk-norm (per-head l2norm via block-diag-ones matmul) + learned scale,
        # applied BEFORE rotary as in the x-transformers reference.
        q = q * jax.lax.rsqrt(
            jnp.dot(q * q, gq, preferred_element_type=jnp.float32) + 1e-12) * qs_ref[l]
        k = k * jax.lax.rsqrt(
            jnp.dot(k * k, gk, preferred_element_type=jnp.float32) + 1e-12) * ks_ref[l]

        # rotary-xpos: rotate_half as a signed-permutation matmul (MXU, no lane
        # shuffles); xpos scale already folded into the cos/sin tables.
        q = q * csq + jnp.dot(q, rpq, preferred_element_type=jnp.float32) * snq
        k = k * csk + jnp.dot(k, rpk, preferred_element_type=jnp.float32) * snk

        # GQA attention; per-head outputs packed lane-dense -> ONE W_o matmul.
        heads_out = []
        for g in range(KV_HEADS):
            kh = k[:, g * DIM_HEAD:(g + 1) * DIM_HEAD].astype(jnp.bfloat16)
            vh = v[:, g * DIM_HEAD:(g + 1) * DIM_HEAD].astype(jnp.bfloat16)
            for gi in range(GROUP):
                h = g * GROUP + gi
                qh = q[:, h * DIM_HEAD:(h + 1) * DIM_HEAD].astype(jnp.bfloat16)
                # TODO(synk): at production scale hoist K^T per KV head / use a
                #             flash-style S-tiled loop instead of a full [S,S].
                s = jax.lax.dot_general(qh, kh, (((1,), (1,)), ((), ())),
                                        preferred_element_type=jnp.float32)   # [S,S]
                s = jnp.where(causal, s + ALIBI_SLOPES[h] * dist, MASK_NEG)
                m = jnp.max(s, axis=-1, keepdims=True)
                p = jnp.exp(s - m)
                p = p / jnp.sum(p, axis=-1, keepdims=True)         # exact softmax
                heads_out.append(jnp.dot(p.astype(jnp.bfloat16), vh,
                                         preferred_element_type=jnp.float32))
        ao = jnp.concatenate(heads_out, axis=-1)                   # [S, QD]
        x = x + jnp.dot(ao.astype(jnp.bfloat16), wo_ref[l],
                        preferred_element_type=jnp.float32)        # fused out-proj

        # ------------------ feed-forward block (pre-norm, GELU) --------------
        xn2 = _ln_rows(x, lnp[2:3, :], lnp[3:4, :])
        h1 = jnp.dot(xn2.astype(jnp.bfloat16), w1_ref[l],
                     preferred_element_type=jnp.float32) + b1_ref[l]
        h1 = jax.nn.gelu(h1, approximate=True)
        x = x + jnp.dot(h1.astype(jnp.bfloat16), w2_ref[l],
                        preferred_element_type=jnp.float32) + b2_ref[l]

    # ---- final norm + logits projection: single lane-dense store ------------
    xf = _ln_rows(x, lnf_ref[0:1, :], lnf_ref[1:2, :])
    logits_ref[...] = jnp.dot(xf.astype(jnp.bfloat16), wlog_ref[...],
                              preferred_element_type=jnp.float32)


def _rep(shape):
    """Full-array block replicated to every grid step (weights / tables)."""
    return pl.BlockSpec(shape, lambda b, _n=len(shape): (0,) * _n)


def gemini_stack(params, tokens):
    """Full Transformer forward (embed -> DEPTH layers -> logits) as ONE
    pallas_call, gridded over batch ('parallel' -> both TCs on v7x)."""
    B, S = tokens.shape
    Sp = max(_round_up(S, SUBLANE), SUBLANE)
    if Sp != S:
        # causal masking => the padded tail cannot influence the true prefix
        tokens = jnp.pad(tokens, ((0, 0), (0, Sp - S)))
    csq, snq, csk, snk, rpq, rpk, gq, gk = _static_tables(Sp)

    in_specs = [
        pl.BlockSpec((Sp, 1), lambda b: (b, 0)),        # tokens (per-batch rows)
        _rep((VOCAB, DIM)),                             # token embedding
        _rep((Sp, QD)), _rep((Sp, QD)),                 # rotary cos/sin (q)
        _rep((Sp, KD)), _rep((Sp, KD)),                 # rotary cos/sin (k)
        _rep((QD, QD)), _rep((KD, KD)),                 # rotate_half permutations
        _rep((QD, QD)), _rep((KD, KD)),                 # per-head sum-of-squares
        _rep((DEPTH, 4, DIM)),                          # ln1_g, ln1_b, ln2_g, ln2_b
        _rep((DEPTH, DIM, QKVD)),                       # fused W_qkv   (bf16)
        _rep((DEPTH, 1, QD)), _rep((DEPTH, 1, KD)),     # qk-norm scales
        _rep((DEPTH, QD, DIM)),                         # W_o [H*Dh, D] (bf16)
        _rep((DEPTH, DIM, HID)), _rep((DEPTH, 1, HID)), # W1, b1
        _rep((DEPTH, HID, DIM)), _rep((DEPTH, 1, DIM)), # W2, b2
        _rep((2, DIM)),                                 # final LN
        _rep((DIM, VOCAB)),                             # logits proj   (bf16)
    ]
    logits = pl.pallas_call(
        _gemini_stack_kernel,
        out_shape=jax.ShapeDtypeStruct((B * Sp, VOCAB), jnp.float32),
        grid=(B,),
        in_specs=in_specs,
        out_specs=pl.BlockSpec((Sp, VOCAB), lambda b: (b, 0)),
        compiler_params=pltpu.CompilerParams(
            dimension_semantics=("parallel",),          # batch -> 2nd TC on v7x
        ),
    )(tokens.reshape(B * Sp, 1),
      params["tok_emb"], csq, snq, csk, snk, rpq, rpk, gq, gk,
      params["ln"], params["w_qkv"], params["q_scale"], params["k_scale"],
      params["wo"], params["w1"], params["b1"], params["w2"], params["b2"],
      params["lnf"], params["w_logits"])
    return logits.reshape(B, Sp, VOCAB)[:, :S]


# ------------------------- wrapper / loss (XLA glue) -------------------------
def autoregressive_wrapper_forward(params, tokens):
    """zeta AutoregressiveWrapper.forward: returns (logits, loss)."""
    inp, target = tokens[:, :-1], tokens[:, 1:]
    logits = gemini_stack(params, inp)
    logp = jax.nn.log_softmax(logits, axis=-1)
    nll = -jnp.take_along_axis(logp, target[..., None], axis=-1)[..., 0]
    return logits, nll.mean()


def gemini_forward(params, text, img=None, audio=None):
    # TODO(synk): ImgToTransformer / AudioToLangEmbedding branches not implemented
    #             (their definitions live outside the provided module); this run
    #             exercises the text-only path (img=None, audio=None).
    if img is not None or audio is not None:
        raise NotImplementedError("image/audio branches not implemented")
    logits, _loss = autoregressive_wrapper_forward(params, text)
    model_input = logits
    # TODO(synk): original `self.decoder(model_input, padded_x=model_input[0])`
    #             feeds float logits into a token embedding (ill-formed in PyTorch);
    #             approximated here by greedy-decoding the logits back to token ids.
    tokens2 = jnp.argmax(model_input, axis=-1).astype(jnp.int32)
    return autoregressive_wrapper_forward(params, tokens2)


# ------------------------------ parameters -----------------------------------
def init_params(key):
    keys = iter(jax.random.split(key, 16))

    def nrm(shape, dtype=jnp.float32, std=0.02):
        w = jax.random.normal(next(keys), shape, jnp.float32) * std
        return w.astype(dtype)

    return {
        "tok_emb": nrm((VOCAB, DIM)),
        # per-layer LN params stacked as (ln1_g, ln1_b, ln2_g, ln2_b)
        "ln": jnp.tile(jnp.array([1.0, 0.0, 1.0, 0.0], jnp.float32).reshape(1, 4, 1),
                       (DEPTH, 1, DIM)),
        # fused q|k|v projection, bf16 weights (halves weight DMA bytes)
        "w_qkv": nrm((DEPTH, DIM, QKVD), jnp.bfloat16),
        # learned per-dim qk-norm scales (init ones); the softmax scale (10.0,
        # x-transformers qk_norm) is folded into the q scale here.
        "q_scale": jnp.full((DEPTH, 1, QD), QK_NORM_SCALE, jnp.float32),
        "k_scale": jnp.ones((DEPTH, 1, KD), jnp.float32),
        # output projection stored pre-packed [H*Dh, D] for the single fused matmul
        "wo": nrm((DEPTH, QD, DIM), jnp.bfloat16),
        "w1": nrm((DEPTH, DIM, HID), jnp.bfloat16),
        "b1": jnp.zeros((DEPTH, 1, HID), jnp.float32),
        "w2": nrm((DEPTH, HID, DIM), jnp.bfloat16),
        "b2": jnp.zeros((DEPTH, 1, DIM), jnp.float32),
        "lnf": jnp.stack([jnp.ones((DIM,), jnp.float32),
                          jnp.zeros((DIM,), jnp.float32)]),
        "w_logits": nrm((DIM, VOCAB), jnp.bfloat16),
    }


# --------------------------------- main ---------------------------------------
if __name__ == "__main__":
    root = jax.random.PRNGKey(0)
    pkey, tkey = jax.random.split(root)
    params = init_params(pkey)
    # text token ids: [batch=2, seq=9]  (wrapper shifts -> model sees length 8)
    text = jax.random.randint(tkey, (2, 9), 0, VOCAB, dtype=jnp.int32)

    logits, loss = jax.jit(gemini_forward)(params, text)
    jax.block_until_ready((logits, loss))

    assert logits.shape == (2, 7, VOCAB)
    assert bool(jnp.all(jnp.isfinite(logits)))
    assert bool(jnp.isfinite(loss))
    print("KERNEL_OK")
</pallas_src>

<mosaic_0001>
module attributes {stable_mosaic.version = 11 : i64} {
  func.func @_gemini_stack_kernel(%arg0: i32, %arg1: memref<8x1xi32, #tpu.memory_space<vmem>>, %arg2: memref<256x32xf32, #tpu.memory_space<vmem>>, %arg3: memref<8x32xf32, #tpu.memory_space<vmem>>, %arg4: memref<8x32xf32, #tpu.memory_space<vmem>>, %arg5: memref<8x16xf32, #tpu.memory_space<vmem>>, %arg6: memref<8x16xf32, #tpu.memory_space<vmem>>, %arg7: memref<32x32xf32, #tpu.memory_space<vmem>>, %arg8: memref<16x16xf32, #tpu.memory_space<vmem>>, %arg9: memref<32x32xf32, #tpu.memory_space<vmem>>, %arg10: memref<16x16xf32, #tpu.memory_space<vmem>>, %arg11: memref<2x4x32xf32, #tpu.memory_space<vmem>>, %arg12: memref<2x32x64xbf16, #tpu.memory_space<vmem>>, %arg13: memref<2x1x32xf32, #tpu.memory_space<vmem>>, %arg14: memref<2x1x16xf32, #tpu.memory_space<vmem>>, %arg15: memref<2x32x32xbf16, #tpu.memory_space<vmem>>, %arg16: memref<2x32x128xbf16, #tpu.memory_space<vmem>>, %arg17: memref<2x1x128xf32, #tpu.memory_space<vmem>>, %arg18: memref<2x128x32xbf16, #tpu.memory_space<vmem>>, %arg19: memref<2x1x32xf32, #tpu.memory_space<vmem>>, %arg20: memref<2x32xf32, #tpu.memory_space<vmem>>, %arg21: memref<32x256xbf16, #tpu.memory_space<vmem>>, %arg22: memref<8x256xf32, #tpu.memory_space<vmem>>) attributes {dimension_semantics = [#tpu.dimension_semantics<parallel>], iteration_bounds = array<i64: 2>, scalar_prefetch = 0 : i64, scratch_operands = 0 : i64, tpu.core_type = #tpu.core_type<tc>, window_params = [{transform_indices = @transform_0, window_bounds = array<i64: 8, 1>}, {pipeline_mode = #tpu.pipeline_mode<synchronous>, transform_indices = @transform_1, window_bounds = array<i64: 256, 32>}, {pipeline_mode = #tpu.pipeline_mode<synchronous>, transform_indices = @transform_2, window_bounds = array<i64: 8, 32>}, {pipeline_mode = #tpu.pipeline_mode<synchronous>, transform_indices = @transform_3, window_bounds = array<i64: 8, 32>}, {pipeline_mode = #tpu.pipeline_mode<synchronous>, transform_indices = @transform_4, window_bounds = array<i64: 8, 16>}, {pipeline_mode = #tpu.pipeline_mode<synchronous>, transform_indices = @transform_5, window_bounds = array<i64: 8, 16>}, {pipeline_mode = #tpu.pipeline_mode<synchronous>, transform_indices = @transform_6, window_bounds = array<i64: 32, 32>}, {pipeline_mode = #tpu.pipeline_mode<synchronous>, transform_indices = @transform_7, window_bounds = array<i64: 16, 16>}, {pipeline_mode = #tpu.pipeline_mode<synchronous>, transform_indices = @transform_8, window_bounds = array<i64: 32, 32>}, {pipeline_mode = #tpu.pipeline_mode<synchronous>, transform_indices = @transform_9, window_bounds = array<i64: 16, 16>}, {pipeline_mode = #tpu.pipeline_mode<synchronous>, transform_indices = @transform_10, window_bounds = array<i64: 2, 4, 32>}, {pipeline_mode = #tpu.pipeline_mode<synchronous>, transform_indices = @transform_11, window_bounds = array<i64: 2, 32, 64>}, {pipeline_mode = #tpu.pipeline_mode<synchronous>, transform_indices = @transform_12, window_bounds = array<i64: 2, 1, 32>}, {pipeline_mode = #tpu.pipeline_mode<synchronous>, transform_indices = @transform_13, window_bounds = array<i64: 2, 1, 16>}, {pipeline_mode = #tpu.pipeline_mode<synchronous>, transform_indices = @transform_14, window_bounds = array<i64: 2, 32, 32>}, {pipeline_mode = #tpu.pipeline_mode<synchronous>, transform_indices = @transform_15, window_bounds = array<i64: 2, 32, 128>}, {pipeline_mode = #tpu.pipeline_mode<synchronous>, transform_indices = @transform_16, window_bounds = array<i64: 2, 1, 128>}, {pipeline_mode = #tpu.pipeline_mode<synchronous>, transform_indices = @transform_17, window_bounds = array<i64: 2, 128, 32>}, {pipeline_mode = #tpu.pipeline_mode<synchronous>, transform_indices = @transform_18, window_bounds = array<i64: 2, 1, 32>}, {pipeline_mode = #tpu.pipeline_mode<synchronous>, transform_indices = @transform_19, window_bounds = array<i64: 2, 32>}, {pipeline_mode = #tpu.pipeline_mode<synchronous>, transform_indices = @transform_20, window_bounds = array<i64: 32, 256>}, {transform_indices = @transform_21, window_bounds = array<i64: 8, 256>}]} {
    %0 = tpu.iota {dimensions = array<i32: 1>} : vector<8x256xi32>
    %c0 = arith.constant 0 : index
    %c0_0 = arith.constant 0 : index
    %1 = vector.load %arg1[%c0, %c0_0] : memref<8x1xi32, #tpu.memory_space<vmem>>, vector<8x1xi32>
    %2 = vector.broadcast %1 : vector<8x1xi32> to vector<8x256xi32>
    %3 = arith.cmpi eq, %0, %2 : vector<8x256xi32>
    %4 = arith.extui %3 : vector<8x256xi1> to vector<8x256xi32>
    %5 = arith.sitofp %4 : vector<8x256xi32> to vector<8x256xf32>
    %c0_1 = arith.constant 0 : index
    %c0_2 = arith.constant 0 : index
    %6 = vector.load %arg2[%c0_1, %c0_2] : memref<256x32xf32, #tpu.memory_space<vmem>>, vector<256x32xf32>
    %cst = arith.constant dense<0.000000e+00> : vector<8x32xf32>
    %7 = tpu.matmul %5, %6, %cst {dimension_numbers = #tpu.dot_dimension_numbers<[1], [0], [0], [1], [0, 0, 1, 1], [], []>} : vector<8x256xf32>, vector<256x32xf32>, vector<8x32xf32> -> vector<8x32xf32>
    %8 = tpu.iota {dimensions = array<i32: 0>} : vector<8x8xi32>
    %9 = tpu.iota {dimensions = array<i32: 1>} : vector<8x8xi32>
    %10 = arith.cmpi sle, %9, %8 : vector<8x8xi32>
    %11 = arith.subi %9, %8 : vector<8x8xi32>
    %12 = math.absi %11 : vector<8x8xi32>
    %13 = arith.sitofp %12 : vector<8x8xi32> to vector<8x8xf32>
    %cst_3 = arith.constant 0.000000e+00 : f32
    %14 = vector.broadcast %cst_3 : f32 to vector<8x8xf32>
    %15 = arith.subf %14, %13 : vector<8x8xf32>
    %c0_4 = arith.constant 0 : index
    %c0_5 = arith.constant 0 : index
    %16 = vector.load %arg3[%c0_4, %c0_5] : memref<8x32xf32, #tpu.memory_space<vmem>>, vector<8x32xf32>
    %c0_6 = arith.constant 0 : index
    %c0_7 = arith.constant 0 : index
    %17 = vector.load %arg4[%c0_6, %c0_7] : memref<8x32xf32, #tpu.memory_space<vmem>>, vector<8x32xf32>
    %c0_8 = arith.constant 0 : index
    %c0_9 = arith.constant 0 : index
    %18 = vector.load %arg5[%c0_8, %c0_9] : memref<8x16xf32, #tpu.memory_space<vmem>>, vector<8x16xf32>
    %c0_10 = arith.constant 0 : index
    %c0_11 = arith.constant 0 : index
    %19 = vector.load %arg6[%c0_10, %c0_11] : memref<8x16xf32, #tpu.memory_space<vmem>>, vector<8x16xf32>
    %c0_12 = arith.constant 0 : index
    %c0_13 = arith.constant 0 : index
    %20 = vector.load %arg7[%c0_12, %c0_13] : memref<32x32xf32, #tpu.memory_space<vmem>>, vector<32x32xf32>
    %c0_14 = arith.constant 0 : index
    %c0_15 = arith.constant 0 : index
    %21 = vector.load %arg8[%c0_14, %c0_15] : memref<16x16xf32, #tpu.memory_space<vmem>>, vector<16x16xf32>
    %c0_16 = arith.constant 0 : index
    %c0_17 = arith.constant 0 : index
    %22 = vector.load %arg9[%c0_16, %c0_17] : memref<32x32xf32, #tpu.memory_space<vmem>>, vector<32x32xf32>
    %c0_18 = arith.constant 0 : index
    %c0_19 = arith.constant 0 : index
    %23 = vector.load %arg10[%c0_18, %c0_19] : memref<16x16xf32, #tpu.memory_space<vmem>>, vector<16x16xf32>
    %c0_20 = arith.constant 0 : index
    %c0_21 = arith.constant 0 : index
    %c0_22 = arith.constant 0 : index
    %24 = vector.load %arg11[%c0_20, %c0_21, %c0_22] : memref<2x4x32xf32, #tpu.memory_space<vmem>>, vector<1x4x32xf32>
    %25 = vector.shape_cast %24 : vector<1x4x32xf32> to vector<4x32xf32>
    %26 = vector.extract_strided_slice %25 {offsets = [0, 0], sizes = [1, 32], strides = [1, 1]} : vector<4x32xf32> to vector<1x32xf32>
    %27 = vector.extract_strided_slice %25 {offsets = [1, 0], sizes = [1, 32], strides = [1, 1]} : vector<4x32xf32> to vector<1x32xf32>
    %cst_23 = arith.constant dense<0.000000e+00> : vector<8xf32>
    %28 = vector.multi_reduction <add>, %7, %cst_23 [1] : vector<8x32xf32> to vector<8xf32>
    %29 = vector.shape_cast %28 : vector<8xf32> to vector<8x1xf32>
    %cst_24 = arith.constant 3.200000e+01 : f32
    %30 = vector.broadcast %cst_24 : f32 to vector<8x1xf32>
    %31 = arith.divf %29, %30 : vector<8x1xf32>
    %32 = vector.broadcast %31 : vector<8x1xf32> to vector<8x32xf32>
    %33 = arith.subf %7, %32 : vector<8x32xf32>
    %34 = arith.mulf %33, %33 : vector<8x32xf32>
    %cst_25 = arith.constant dense<0.000000e+00> : vector<8xf32>
    %35 = vector.multi_reduction <add>, %34, %cst_25 [1] : vector<8x32xf32> to vector<8xf32>
    %36 = vector.shape_cast %35 : vector<8xf32> to vector<8x1xf32>
    %cst_26 = arith.constant 3.200000e+01 : f32
    %37 = vector.broadcast %cst_26 : f32 to vector<8x1xf32>
    %38 = arith.divf %36, %37 : vector<8x1xf32>
    %39 = vector.broadcast %31 : vector<8x1xf32> to vector<8x32xf32>
    %40 = arith.subf %7, %39 : vector<8x32xf32>
    %cst_27 = arith.constant 9.99999974E-6 : f32
    %41 = vector.broadcast %cst_27 : f32 to vector<8x1xf32>
    %42 = arith.addf %38, %41 : vector<8x1xf32>
    %43 = math.rsqrt %42 : vector<8x1xf32>
    %44 = vector.broadcast %43 : vector<8x1xf32> to vector<8x32xf32>
    %45 = arith.mulf %40, %44 : vector<8x32xf32>
    %46 = vector.broadcast %26 : vector<1x32xf32> to vector<8x32xf32>
    %47 = arith.mulf %45, %46 : vector<8x32xf32>
    %48 = vector.broadcast %27 : vector<1x32xf32> to vector<8x32xf32>
    %49 = arith.addf %47, %48 : vector<8x32xf32>
    %50 = arith.truncf %49 : vector<8x32xf32> to vector<8x32xbf16>
    %c0_28 = arith.constant 0 : index
    %c0_29 = arith.constant 0 : index
    %c0_30 = arith.constant 0 : index
    %51 = vector.load %arg12[%c0_28, %c0_29, %c0_30] : memref<2x32x64xbf16, #tpu.memory_space<vmem>>, vector<1x32x64xbf16>
    %52 = vector.shape_cast %51 : vector<1x32x64xbf16> to vector<32x64xbf16>
    %cst_31 = arith.constant dense<0.000000e+00> : vector<8x64xf32>
    %53 = tpu.matmul %50, %52, %cst_31 {dimension_numbers = #tpu.dot_dimension_numbers<[1], [0], [0], [1], [0, 0, 1, 1], [], []>} : vector<8x32xbf16>, vector<32x64xbf16>, vector<8x64xf32> -> vector<8x64xf32>
    %54 = vector.extract_strided_slice %53 {offsets = [0, 0], sizes = [8, 32], strides = [1, 1]} : vector<8x64xf32> to vector<8x32xf32>
    %55 = vector.extract_strided_slice %53 {offsets = [0, 32], sizes = [8, 16], strides = [1, 1]} : vector<8x64xf32> to vector<8x16xf32>
    %56 = vector.extract_strided_slice %53 {offsets = [0, 48], sizes = [8, 16], strides = [1, 1]} : vector<8x64xf32> to vector<8x16xf32>
    %57 = arith.mulf %54, %54 : vector<8x32xf32>
    %cst_32 = arith.constant dense<0.000000e+00> : vector<8x32xf32>
    %58 = tpu.matmul %57, %22, %cst_32 {dimension_numbers = #tpu.dot_dimension_numbers<[1], [0], [0], [1], [0, 0, 1, 1], [], []>} : vector<8x32xf32>, vector<32x32xf32>, vector<8x32xf32> -> vector<8x32xf32>
    %cst_33 = arith.constant 9.99999996E-13 : f32
    %59 = vector.broadcast %cst_33 : f32 to vector<8x32xf32>
    %60 = arith.addf %58, %59 : vector<8x32xf32>
    %61 = math.rsqrt %60 : vector<8x32xf32>
    %62 = arith.mulf %54, %61 : vector<8x32xf32>
    %c0_34 = arith.constant 0 : index
    %c0_35 = arith.constant 0 : index
    %c0_36 = arith.constant 0 : index
    %63 = vector.load %arg13[%c0_34, %c0_35, %c0_36] : memref<2x1x32xf32, #tpu.memory_space<vmem>>, vector<1x1x32xf32>
    %64 = vector.shape_cast %63 : vector<1x1x32xf32> to vector<1x32xf32>
    %65 = vector.broadcast %64 : vector<1x32xf32> to vector<8x32xf32>
    %66 = arith.mulf %62, %65 : vector<8x32xf32>
    %67 = arith.mulf %55, %55 : vector<8x16xf32>
    %cst_37 = arith.constant dense<0.000000e+00> : vector<8x16xf32>
    %68 = tpu.matmul %67, %23, %cst_37 {dimension_numbers = #tpu.dot_dimension_numbers<[1], [0], [0], [1], [0, 0, 1, 1], [], []>} : vector<8x16xf32>, vector<16x16xf32>, vector<8x16xf32> -> vector<8x16xf32>
    %cst_38 = arith.constant 9.99999996E-13 : f32
    %69 = vector.broadcast %cst_38 : f32 to vector<8x16xf32>
    %70 = arith.addf %68, %69 : vector<8x16xf32>
    %71 = math.rsqrt %70 : vector<8x16xf32>
    %72 = arith.mulf %55, %71 : vector<8x16xf32>
    %c0_39 = arith.constant 0 : index
    %c0_40 = arith.constant 0 : index
    %c0_41 = arith.constant 0 : index
    %73 = vector.load %arg14[%c0_39, %c0_40, %c0_41] : memref<2x1x16xf32, #tpu.memory_space<vmem>>, vector<1x1x16xf32>
    %74 = vector.shape_cast %73 : vector<1x1x16xf32> to vector<1x16xf32>
    %75 = vector.broadcast %74 : vector<1x16xf32> to vector<8x16xf32>
    %76 = arith.mulf %72, %75 : vector<8x16xf32>
    %77 = arith.mulf %66, %16 : vector<8x32xf32>
    %cst_42 = arith.constant dense<0.000000e+00> : vector<8x32xf32>
    %78 = tpu.matmul %66, %20, %cst_42 {dimension_numbers = #tpu.dot_dimension_numbers<[1], [0], [0], [1], [0, 0, 1, 1], [], []>} : vector<8x32xf32>, vector<32x32xf32>, vector<8x32xf32> -> vector<8x32xf32>
    %79 = arith.mulf %78, %17 : vector<8x32xf32>
    %80 = arith.addf %77, %79 : vector<8x32xf32>
    %81 = arith.mulf %76, %18 : vector<8x16xf32>
    %cst_43 = arith.constant dense<0.000000e+00> : vector<8x16xf32>
    %82 = tpu.matmul %76, %21, %cst_43 {dimension_numbers = #tpu.dot_dimension_numbers<[1], [0], [0], [1], [0, 0, 1, 1], [], []>} : vector<8x16xf32>, vector<16x16xf32>, vector<8x16xf32> -> vector<8x16xf32>
    %83 = arith.mulf %82, %19 : vector<8x16xf32>
    %84 = arith.addf %81, %83 : vector<8x16xf32>
    %85 = vector.extract_strided_slice %84 {offsets = [0, 0], sizes = [8, 8], strides = [1, 1]} : vector<8x16xf32> to vector<8x8xf32>
    %86 = arith.truncf %85 : vector<8x8xf32> to vector<8x8xbf16>
    %87 = vector.extract_strided_slice %56 {offsets = [0, 0], sizes = [8, 8], strides = [1, 1]} : vector<8x16xf32> to vector<8x8xf32>
    %88 = arith.truncf %87 : vector<8x8xf32> to vector<8x8xbf16>
    %89 = vector.extract_strided_slice %80 {offsets = [0, 0], sizes = [8, 8], strides = [1, 1]} : vector<8x32xf32> to vector<8x8xf32>
    %90 = arith.truncf %89 : vector<8x8xf32> to vector<8x8xbf16>
    %cst_44 = arith.constant dense<0.000000e+00> : vector<8x8xf32>
    %91 = tpu.matmul %90, %86, %cst_44 {dimension_numbers = #tpu.dot_dimension_numbers<[1], [1], [0], [0], [0, 0, 1, 0], [], []>} : vector<8x8xbf16>, vector<8x8xbf16>, vector<8x8xf32> -> vector<8x8xf32>
    %cst_45 = arith.constant 6.250000e-02 : f32
    %92 = vector.broadcast %cst_45 : f32 to vector<8x8xf32>
    %93 = arith.mulf %92, %15 : vector<8x8xf32>
    %94 = arith.addf %91, %93 : vector<8x8xf32>
    %cst_46 = arith.constant -1.000000e+30 : f32
    %95 = vector.broadcast %cst_46 : f32 to vector<8x8xf32>
    %96 = arith.select %10, %94, %95 : vector<8x8xi1>, vector<8x8xf32>
    %cst_47 = arith.constant dense<0xFF800000> : vector<8xf32>
    %97 = vector.multi_reduction <maximumf>, %96, %cst_47 [1] : vector<8x8xf32> to vector<8xf32>
    %98 = vector.shape_cast %97 : vector<8xf32> to vector<8x1xf32>
    %99 = vector.broadcast %98 : vector<8x1xf32> to vector<8x8xf32>
    %100 = arith.subf %96, %99 : vector<8x8xf32>
    %101 = math.exp %100 : vector<8x8xf32>
    %cst_48 = arith.constant dense<0.000000e+00> : vector<8xf32>
    %102 = vector.multi_reduction <add>, %101, %cst_48 [1] : vector<8x8xf32> to vector<8xf32>
    %103 = vector.shape_cast %102 : vector<8xf32> to vector<8x1xf32>
    %104 = vector.broadcast %103 : vector<8x1xf32> to vector<8x8xf32>
    %105 = arith.divf %101, %104 : vector<8x8xf32>
    %106 = arith.truncf %105 : vector<8x8xf32> to vector<8x8xbf16>
    %cst_49 = arith.constant dense<0.000000e+00> : vector<8x8xf32>
    %107 = tpu.matmul %106, %88, %cst_49 {dimension_numbers = #tpu.dot_dimension_numbers<[1], [0], [0], [1], [0, 0, 1, 1], [], []>} : vector<8x8xbf16>, vector<8x8xbf16>, vector<8x8xf32> -> vector<8x8xf32>
    %108 = vector.extract_strided_slice %80 {offsets = [0, 8], sizes = [8, 8], strides = [1, 1]} : vector<8x32xf32> to vector<8x8xf32>
    %109 = arith.truncf %108 : vector<8x8xf32> to vector<8x8xbf16>
    %cst_50 = arith.constant dense<0.000000e+00> : vector<8x8xf32>
    %110 = tpu.matmul %109, %86, %cst_50 {dimension_numbers = #tpu.dot_dimension_numbers<[1], [1], [0], [0], [0, 0, 1, 0], [], []>} : vector<8x8xbf16>, vector<8x8xbf16>, vector<8x8xf32> -> vector<8x8xf32>
    %cst_51 = arith.constant 3.906250e-03 : f32
    %111 = vector.broadcast %cst_51 : f32 to vector<8x8xf32>
    %112 = arith.mulf %111, %15 : vector<8x8xf32>
    %113 = arith.addf %110, %112 : vector<8x8xf32>
    %cst_52 = arith.constant -1.000000e+30 : f32
    %114 = vector.broadcast %cst_52 : f32 to vector<8x8xf32>
    %115 = arith.select %10, %113, %114 : vector<8x8xi1>, vector<8x8xf32>
    %cst_53 = arith.constant dense<0xFF800000> : vector<8xf32>
    %116 = vector.multi_reduction <maximumf>, %115, %cst_53 [1] : vector<8x8xf32> to vector<8xf32>
    %117 = vector.shape_cast %116 : vector<8xf32> to vector<8x1xf32>
    %118 = vector.broadcast %117 : vector<8x1xf32> to vector<8x8xf32>
    %119 = arith.subf %115, %118 : vector<8x8xf32>
    %120 = math.exp %119 : vector<8x8xf32>
    %cst_54 = arith.constant dense<0.000000e+00> : vector<8xf32>
    %121 = vector.multi_reduction <add>, %120, %cst_54 [1] : vector<8x8xf32> to vector<8xf32>
    %122 = vector.shape_cast %121 : vector<8xf32> to vector<8x1xf32>
    %123 = vector.broadcast %122 : vector<8x1xf32> to vector<8x8xf32>
    %124 = arith.divf %120, %123 : vector<8x8xf32>
    %125 = arith.truncf %124 : vector<8x8xf32> to vector<8x8xbf16>
    %cst_55 = arith.constant dense<0.000000e+00> : vector<8x8xf32>
    %126 = tpu.matmul %125, %88, %cst_55 {dimension_numbers = #tpu.dot_dimension_numbers<[1], [0], [0], [1], [0, 0, 1, 1], [], []>} : vector<8x8xbf16>, vector<8x8xbf16>, vector<8x8xf32> -> vector<8x8xf32>
    %127 = vector.extract_strided_slice %84 {offsets = [0, 8], sizes = [8, 8], strides = [1, 1]} : vector<8x16xf32> to vector<8x8xf32>
    %128 = arith.truncf %127 : vector<8x8xf32> to vector<8x8xbf16>
    %129 = vector.extract_strided_slice %56 {offsets = [0, 8], sizes = [8, 8], strides = [1, 1]} : vector<8x16xf32> to vector<8x8xf32>
    %130 = arith.truncf %129 : vector<8x8xf32> to vector<8x8xbf16>
    %131 = vector.extract_strided_slice %80 {offsets = [0, 16], sizes = [8, 8], strides = [1, 1]} : vector<8x32xf32> to vector<8x8xf32>
    %132 = arith.truncf %131 : vector<8x8xf32> to vector<8x8xbf16>
    %cst_56 = arith.constant dense<0.000000e+00> : vector<8x8xf32>
    %133 = tpu.matmul %132, %128, %cst_56 {dimension_numbers = #tpu.dot_dimension_numbers<[1], [1], [0], [0], [0, 0, 1, 0], [], []>} : vector<8x8xbf16>, vector<8x8xbf16>, vector<8x8xf32> -> vector<8x8xf32>
    %cst_57 = arith.constant 0.000000e+00 : f32
    %134 = vector.broadcast %cst_57 : f32 to vector<8x8xf32>
    %135 = arith.mulf %134, %15 : vector<8x8xf32>
    %136 = arith.addf %133, %135 : vector<8x8xf32>
    %cst_58 = arith.constant -1.000000e+30 : f32
    %137 = vector.broadcast %cst_58 : f32 to vector<8x8xf32>
    %138 = arith.select %10, %136, %137 : vector<8x8xi1>, vector<8x8xf32>
    %cst_59 = arith.constant dense<0xFF800000> : vector<8xf32>
    %139 = vector.multi_reduction <maximumf>, %138, %cst_59 [1] : vector<8x8xf32> to vector<8xf32>
    %140 = vector.shape_cast %139 : vector<8xf32> to vector<8x1xf32>
    %141 = vector.broadcast %140 : vector<8x1xf32> to vector<8x8xf32>
    %142 = arith.subf %138, %141 : vector<8x8xf32>
    %143 = math.exp %142 : vector<8x8xf32>
    %cst_60 = arith.constant dense<0.000000e+00> : vector<8xf32>
    %144 = vector.multi_reduction <add>, %143, %cst_60 [1] : vector<8x8xf32> to vector<8xf32>
    %145 = vector.shape_cast %144 : vector<8xf32> to vector<8x1xf32>
    %146 = vector.broadcast %145 : vector<8x1xf32> to vector<8x8xf32>
    %147 = arith.divf %143, %146 : vector<8x8xf32>
    %148 = arith.truncf %147 : vector<8x8xf32> to vector<8x8xbf16>
    %cst_61 = arith.constant dense<0.000000e+00> : vector<8x8xf32>
    %149 = tpu.matmul %148, %130, %cst_61 {dimension_numbers = #tpu.dot_dimension_numbers<[1], [0], [0], [1], [0, 0, 1, 1], [], []>} : vector<8x8xbf16>, vector<8x8xbf16>, vector<8x8xf32> -> vector<8x8xf32>
    %150 = vector.extract_strided_slice %80 {offsets = [0, 24], sizes = [8, 8], strides = [1, 1]} : vector<8x32xf32> to vector<8x8xf32>
    %151 = arith.truncf %150 : vector<8x8xf32> to vector<8x8xbf16>
    %cst_62 = arith.constant dense<0.000000e+00> : vector<8x8xf32>
    %152 = tpu.matmul %151, %128, %cst_62 {dimension_numbers = #tpu.dot_dimension_numbers<[1], [1], [0], [0], [0, 0, 1, 0], [], []>} : vector<8x8xbf16>, vector<8x8xbf16>, vector<8x8xf32> -> vector<8x8xf32>
    %cst_63 = arith.constant 0.000000e+00 : f32
    %153 = vector.broadcast %cst_63 : f32 to vector<8x8xf32>
    %154 = arith.mulf %153, %15 : vector<8x8xf32>
    %155 = arith.addf %152, %154 : vector<8x8xf32>
    %cst_64 = arith.constant -1.000000e+30 : f32
    %156 = vector.broadcast %cst_64 : f32 to vector<8x8xf32>
    %157 = arith.select %10, %155, %156 : vector<8x8xi1>, vector<8x8xf32>
    %cst_65 = arith.constant dense<0xFF800000> : vector<8xf32>
    %158 = vector.multi_reduction <maximumf>, %157, %cst_65 [1] : vector<8x8xf32> to vector<8xf32>
    %159 = vector.shape_cast %158 : vector<8xf32> to vector<8x1xf32>
    %160 = vector.broadcast %159 : vector<8x1xf32> to vector<8x8xf32>
    %161 = arith.subf %157, %160 : vector<8x8xf32>
    %162 = math.exp %161 : vector<8x8xf32>
    %cst_66 = arith.constant dense<0.000000e+00> : vector<8xf32>
    %163 = vector.multi_reduction <add>, %162, %cst_66 [1] : vector<8x8xf32> to vector<8xf32>
    %164 = vector.shape_cast %163 : vector<8xf32> to vector<8x1xf32>
    %165 = vector.broadcast %164 : vector<8x1xf32> to vector<8x8xf32>
    %166 = arith.divf %162, %165 : vector<8x8xf32>
    %167 = arith.truncf %166 : vector<8x8xf32> to vector<8x8xbf16>
    %cst_67 = arith.constant dense<0.000000e+00> : vector<8x8xf32>
    %168 = tpu.matmul %167, %130, %cst_67 {dimension_numbers = #tpu.dot_dimension_numbers<[1], [0], [0], [1], [0, 0, 1, 1], [], []>} : vector<8x8xbf16>, vector<8x8xbf16>, vector<8x8xf32> -> vector<8x8xf32>
    %169 = tpu.concatenate %107, %126, %149, %168 in 1 : vector<8x8xf32>, vector<8x8xf32>, vector<8x8xf32>, vector<8x8xf32> -> vector<8x32xf32>
    %170 = arith.truncf %169 : vector<8x32xf32> to vector<8x32xbf16>
    %c0_68 = arith.constant 0 : index
    %c0_69 = arith.constant 0 : index
    %c0_70 = arith.constant 0 : index
    %171 = vector.load %arg15[%c0_68, %c0_69, %c0_70] : memref<2x32x32xbf16, #tpu.memory_space<vmem>>, vector<1x32x32xbf16>
    %172 = vector.shape_cast %171 : vector<1x32x32xbf16> to vector<32x32xbf16>
    %cst_71 = arith.constant dense<0.000000e+00> : vector<8x32xf32>
    %173 = tpu.matmul %170, %172, %cst_71 {dimension_numbers = #tpu.dot_dimension_numbers<[1], [0], [0], [1], [0, 0, 1, 1], [], []>} : vector<8x32xbf16>, vector<32x32xbf16>, vector<8x32xf32> -> vector<8x32xf32>
    %174 = arith.addf %7, %173 : vector<8x32xf32>
    %175 = vector.extract_strided_slice %25 {offsets = [2, 0], sizes = [1, 32], strides = [1, 1]} : vector<4x32xf32> to vector<1x32xf32>
    %176 = vector.extract_strided_slice %25 {offsets = [3, 0], sizes = [1, 32], strides = [1, 1]} : vector<4x32xf32> to vector<1x32xf32>
    %cst_72 = arith.constant dense<0.000000e+00> : vector<8xf32>
    %177 = vector.multi_reduction <add>, %174, %cst_72 [1] : vector<8x32xf32> to vector<8xf32>
    %178 = vector.shape_cast %177 : vector<8xf32> to vector<8x1xf32>
    %cst_73 = arith.constant 3.200000e+01 : f32
    %179 = vector.broadcast %cst_73 : f32 to vector<8x1xf32>
    %180 = arith.divf %178, %179 : vector<8x1xf32>
    %181 = vector.broadcast %180 : vector<8x1xf32> to vector<8x32xf32>
    %182 = arith.subf %174, %181 : vector<8x32xf32>
    %183 = arith.mulf %182, %182 : vector<8x32xf32>
    %cst_74 = arith.constant dense<0.000000e+00> : vector<8xf32>
    %184 = vector.multi_reduction <add>, %183, %cst_74 [1] : vector<8x32xf32> to vector<8xf32>
    %185 = vector.shape_cast %184 : vector<8xf32> to vector<8x1xf32>
    %cst_75 = arith.constant 3.200000e+01 : f32
    %186 = vector.broadcast %cst_75 : f32 to vector<8x1xf32>
    %187 = arith.divf %185, %186 : vector<8x1xf32>
    %188 = vector.broadcast %180 : vector<8x1xf32> to vector<8x32xf32>
    %189 = arith.subf %174, %188 : vector<8x32xf32>
    %cst_76 = arith.constant 9.99999974E-6 : f32
    %190 = vector.broadcast %cst_76 : f32 to vector<8x1xf32>
    %191 = arith.addf %187, %190 : vector<8x1xf32>
    %192 = math.rsqrt %191 : vector<8x1xf32>
    %193 = vector.broadcast %192 : vector<8x1xf32> to vector<8x32xf32>
    %194 = arith.mulf %189, %193 : vector<8x32xf32>
    %195 = vector.broadcast %175 : vector<1x32xf32> to vector<8x32xf32>
    %196 = arith.mulf %194, %195 : vector<8x32xf32>
    %197 = vector.broadcast %176 : vector<1x32xf32> to vector<8x32xf32>
    %198 = arith.addf %196, %197 : vector<8x32xf32>
    %199 = arith.truncf %198 : vector<8x32xf32> to vector<8x32xbf16>
    %c0_77 = arith.constant 0 : index
    %c0_78 = arith.constant 0 : index
    %c0_79 = arith.constant 0 : index
    %200 = vector.load %arg16[%c0_77, %c0_78, %c0_79] : memref<2x32x128xbf16, #tpu.memory_space<vmem>>, vector<1x32x128xbf16>
    %201 = vector.shape_cast %200 : vector<1x32x128xbf16> to vector<32x128xbf16>
    %cst_80 = arith.constant dense<0.000000e+00> : vector<8x128xf32>
    %202 = tpu.matmul %199, %201, %cst_80 {dimension_numbers = #tpu.dot_dimension_numbers<[1], [0], [0], [1], [0, 0, 1, 1], [], []>} : vector<8x32xbf16>, vector<32x128xbf16>, vector<8x128xf32> -> vector<8x128xf32>
    %c0_81 = arith.constant 0 : index
    %c0_82 = arith.constant 0 : index
    %c0_83 = arith.constant 0 : index
    %203 = vector.load %arg17[%c0_81, %c0_82, %c0_83] : memref<2x1x128xf32, #tpu.memory_space<vmem>>, vector<1x1x128xf32>
    %204 = vector.shape_cast %203 : vector<1x1x128xf32> to vector<1x128xf32>
    %205 = vector.broadcast %204 : vector<1x128xf32> to vector<8x128xf32>
    %206 = arith.addf %202, %205 : vector<8x128xf32>
    %207 = arith.mulf %206, %206 : vector<8x128xf32>
    %208 = arith.mulf %206, %207 : vector<8x128xf32>
    %cst_84 = arith.constant 4.471500e-02 : f32
    %209 = vector.broadcast %cst_84 : f32 to vector<8x128xf32>
    %210 = arith.mulf %209, %208 : vector<8x128xf32>
    %211 = arith.addf %206, %210 : vector<8x128xf32>
    %cst_85 = arith.constant 0.797884583 : f32
    %212 = vector.broadcast %cst_85 : f32 to vector<8x128xf32>
    %213 = arith.mulf %212, %211 : vector<8x128xf32>
    %214 = math.tanh %213 : vector<8x128xf32>
    %cst_86 = arith.constant 1.000000e+00 : f32
    %215 = vector.broadcast %cst_86 : f32 to vector<8x128xf32>
    %216 = arith.addf %215, %214 : vector<8x128xf32>
    %cst_87 = arith.constant 5.000000e-01 : f32
    %217 = vector.broadcast %cst_87 : f32 to vector<8x128xf32>
    %218 = arith.mulf %217, %216 : vector<8x128xf32>
    %219 = arith.mulf %206, %218 : vector<8x128xf32>
    %220 = arith.truncf %219 : vector<8x128xf32> to vector<8x128xbf16>
    %c0_88 = arith.constant 0 : index
    %c0_89 = arith.constant 0 : index
    %c0_90 = arith.constant 0 : index
    %221 = vector.load %arg18[%c0_88, %c0_89, %c0_90] : memref<2x128x32xbf16, #tpu.memory_space<vmem>>, vector<1x128x32xbf16>
    %222 = vector.shape_cast %221 : vector<1x128x32xbf16> to vector<128x32xbf16>
    %cst_91 = arith.constant dense<0.000000e+00> : vector<8x32xf32>
    %223 = tpu.matmul %220, %222, %cst_91 {dimension_numbers = #tpu.dot_dimension_numbers<[1], [0], [0], [1], [0, 0, 1, 1], [], []>} : vector<8x128xbf16>, vector<128x32xbf16>, vector<8x32xf32> -> vector<8x32xf32>
    %224 = arith.addf %174, %223 : vector<8x32xf32>
    %c0_92 = arith.constant 0 : index
    %c0_93 = arith.constant 0 : index
    %c0_94 = arith.constant 0 : index
    %225 = vector.load %arg19[%c0_92, %c0_93, %c0_94] : memref<2x1x32xf32, #tpu.memory_space<vmem>>, vector<1x1x32xf32>
    %226 = vector.shape_cast %225 : vector<1x1x32xf32> to vector<1x32xf32>
    %227 = vector.broadcast %226 : vector<1x32xf32> to vector<8x32xf32>
    %228 = arith.addf %224, %227 : vector<8x32xf32>
    %c1 = arith.constant 1 : index
    %c0_95 = arith.constant 0 : index
    %c0_96 = arith.constant 0 : index
    %229 = vector.load %arg11[%c1, %c0_95, %c0_96] : memref<2x4x32xf32, #tpu.memory_space<vmem>>, vector<1x4x32xf32>
    %230 = vector.shape_cast %229 : vector<1x4x32xf32> to vector<4x32xf32>
    %231 = vector.extract_strided_slice %230 {offsets = [0, 0], sizes = [1, 32], strides = [1, 1]} : vector<4x32xf32> to vector<1x32xf32>
    %232 = vector.extract_strided_slice %230 {offsets = [1, 0], sizes = [1, 32], strides = [1, 1]} : vector<4x32xf32> to vector<1x32xf32>
    %cst_97 = arith.constant dense<0.000000e+00> : vector<8xf32>
    %233 = vector.multi_reduction <add>, %228, %cst_97 [1] : vector<8x32xf32> to vector<8xf32>
    %234 = vector.shape_cast %233 : vector<8xf32> to vector<8x1xf32>
    %cst_98 = arith.constant 3.200000e+01 : f32
    %235 = vector.broadcast %cst_98 : f32 to vector<8x1xf32>
    %236 = arith.divf %234, %235 : vector<8x1xf32>
    %237 = vector.broadcast %236 : vector<8x1xf32> to vector<8x32xf32>
    %238 = arith.subf %228, %237 : vector<8x32xf32>
    %239 = arith.mulf %238, %238 : vector<8x32xf32>
    %cst_99 = arith.constant dense<0.000000e+00> : vector<8xf32>
    %240 = vector.multi_reduction <add>, %239, %cst_99 [1] : vector<8x32xf32> to vector<8xf32>
    %241 = vector.shape_cast %240 : vector<8xf32> to vector<8x1xf32>
    %cst_100 = arith.constant 3.200000e+01 : f32
    %242 = vector.broadcast %cst_100 : f32 to vector<8x1xf32>
    %243 = arith.divf %241, %242 : vector<8x1xf32>
    %244 = vector.broadcast %236 : vector<8x1xf32> to vector<8x32xf32>
    %245 = arith.subf %228, %244 : vector<8x32xf32>
    %cst_101 = arith.constant 9.99999974E-6 : f32
    %246 = vector.broadcast %cst_101 : f32 to vector<8x1xf32>
    %247 = arith.addf %243, %246 : vector<8x1xf32>
    %248 = math.rsqrt %247 : vector<8x1xf32>
    %249 = vector.broadcast %248 : vector<8x1xf32> to vector<8x32xf32>
    %250 = arith.mulf %245, %249 : vector<8x32xf32>
    %251 = vector.broadcast %231 : vector<1x32xf32> to vector<8x32xf32>
    %252 = arith.mulf %250, %251 : vector<8x32xf32>
    %253 = vector.broadcast %232 : vector<1x32xf32> to vector<8x32xf32>
    %254 = arith.addf %252, %253 : vector<8x32xf32>
    %255 = arith.truncf %254 : vector<8x32xf32> to vector<8x32xbf16>
    %c1_102 = arith.constant 1 : index
    %c0_103 = arith.constant 0 : index
    %c0_104 = arith.constant 0 : index
    %256 = vector.load %arg12[%c1_102, %c0_103, %c0_104] : memref<2x32x64xbf16, #tpu.memory_space<vmem>>, vector<1x32x64xbf16>
    %257 = vector.shape_cast %256 : vector<1x32x64xbf16> to vector<32x64xbf16>
    %cst_105 = arith.constant dense<0.000000e+00> : vector<8x64xf32>
    %258 = tpu.matmul %255, %257, %cst_105 {dimension_numbers = #tpu.dot_dimension_numbers<[1], [0], [0], [1], [0, 0, 1, 1], [], []>} : vector<8x32xbf16>, vector<32x64xbf16>, vector<8x64xf32> -> vector<8x64xf32>
    %259 = vector.extract_strided_slice %258 {offsets = [0, 0], sizes = [8, 32], strides = [1, 1]} : vector<8x64xf32> to vector<8x32xf32>
    %260 = vector.extract_strided_slice %258 {offsets = [0, 32], sizes = [8, 16], strides = [1, 1]} : vector<8x64xf32> to vector<8x16xf32>
    %261 = vector.extract_strided_slice %258 {offsets = [0, 48], sizes = [8, 16], strides = [1, 1]} : vector<8x64xf32> to vector<8x16xf32>
    %262 = arith.mulf %259, %259 : vector<8x32xf32>
    %cst_106 = arith.constant dense<0.000000e+00> : vector<8x32xf32>
    %263 = tpu.matmul %262, %22, %cst_106 {dimension_numbers = #tpu.dot_dimension_numbers<[1], [0], [0], [1], [0, 0, 1, 1], [], []>} : vector<8x32xf32>, vector<32x32xf32>, vector<8x32xf32> -> vector<8x32xf32>
    %cst_107 = arith.constant 9.99999996E-13 : f32
    %264 = vector.broadcast %cst_107 : f32 to vector<8x32xf32>
    %265 = arith.addf %263, %264 : vector<8x32xf32>
    %266 = math.rsqrt %265 : vector<8x32xf32>
    %267 = arith.mulf %259, %266 : vector<8x32xf32>
    %c1_108 = arith.constant 1 : index
    %c0_109 = arith.constant 0 : index
    %c0_110 = arith.constant 0 : index
    %268 = vector.load %arg13[%c1_108, %c0_109, %c0_110] : memref<2x1x32xf32, #tpu.memory_space<vmem>>, vector<1x1x32xf32>
    %269 = vector.shape_cast %268 : vector<1x1x32xf32> to vector<1x32xf32>
    %270 = vector.broadcast %269 : vector<1x32xf32> to vector<8x32xf32>
    %271 = arith.mulf %267, %270 : vector<8x32xf32>
    %272 = arith.mulf %260, %260 : vector<8x16xf32>
    %cst_111 = arith.constant dense<0.000000e+00> : vector<8x16xf32>
    %273 = tpu.matmul %272, %23, %cst_111 {dimension_numbers = #tpu.dot_dimension_numbers<[1], [0], [0], [1], [0, 0, 1, 1], [], []>} : vector<8x16xf32>, vector<16x16xf32>, vector<8x16xf32> -> vector<8x16xf32>
    %cst_112 = arith.constant 9.99999996E-13 : f32
    %274 = vector.broadcast %cst_112 : f32 to vector<8x16xf32>
    %275 = arith.addf %273, %274 : vector<8x16xf32>
    %276 = math.rsqrt %275 : vector<8x16xf32>
    %277 = arith.mulf %260, %276 : vector<8x16xf32>
    %c1_113 = arith.constant 1 : index
    %c0_114 = arith.constant 0 : index
    %c0_115 = arith.constant 0 : index
    %278 = vector.load %arg14[%c1_113, %c0_114, %c0_115] : memref<2x1x16xf32, #tpu.memory_space<vmem>>, vector<1x1x16xf32>
    %279 = vector.shape_cast %278 : vector<1x1x16xf32> to vector<1x16xf32>
    %280 = vector.broadcast %279 : vector<1x16xf32> to vector<8x16xf32>
    %281 = arith.mulf %277, %280 : vector<8x16xf32>
    %282 = arith.mulf %271, %16 : vector<8x32xf32>
    %cst_116 = arith.constant dense<0.000000e+00> : vector<8x32xf32>
    %283 = tpu.matmul %271, %20, %cst_116 {dimension_numbers = #tpu.dot_dimension_numbers<[1], [0], [0], [1], [0, 0, 1, 1], [], []>} : vector<8x32xf32>, vector<32x32xf32>, vector<8x32xf32> -> vector<8x32xf32>
    %284 = arith.mulf %283, %17 : vector<8x32xf32>
    %285 = arith.addf %282, %284 : vector<8x32xf32>
    %286 = arith.mulf %281, %18 : vector<8x16xf32>
    %cst_117 = arith.constant dense<0.000000e+00> : vector<8x16xf32>
    %287 = tpu.matmul %281, %21, %cst_117 {dimension_numbers = #tpu.dot_dimension_numbers<[1], [0], [0], [1], [0, 0, 1, 1], [], []>} : vector<8x16xf32>, vector<16x16xf32>, vector<8x16xf32> -> vector<8x16xf32>
    %288 = arith.mulf %287, %19 : vector<8x16xf32>
    %289 = arith.addf %286, %288 : vector<8x16xf32>
    %290 = vector.extract_strided_slice %289 {offsets = [0, 0], sizes = [8, 8], strides = [1, 1]} : vector<8x16xf32> to vector<8x8xf32>
    %291 = arith.truncf %290 : vector<8x8xf32> to vector<8x8xbf16>
    %292 = vector.extract_strided_slice %261 {offsets = [0, 0], sizes = [8, 8], strides = [1, 1]} : vector<8x16xf32> to vector<8x8xf32>
    %293 = arith.truncf %292 : vector<8x8xf32> to vector<8x8xbf16>
    %294 = vector.extract_strided_slice %285 {offsets = [0, 0], sizes = [8, 8], strides = [1, 1]} : vector<8x32xf32> to vector<8x8xf32>
    %295 = arith.truncf %294 : vector<8x8xf32> to vector<8x8xbf16>
    %cst_118 = arith.constant dense<0.000000e+00> : vector<8x8xf32>
    %296 = tpu.matmul %295, %291, %cst_118 {dimension_numbers = #tpu.dot_dimension_numbers<[1], [1], [0], [0], [0, 0, 1, 0], [], []>} : vector<8x8xbf16>, vector<8x8xbf16>, vector<8x8xf32> -> vector<8x8xf32>
    %cst_119 = arith.constant 6.250000e-02 : f32
    %297 = vector.broadcast %cst_119 : f32 to vector<8x8xf32>
    %298 = arith.mulf %297, %15 : vector<8x8xf32>
    %299 = arith.addf %296, %298 : vector<8x8xf32>
    %cst_120 = arith.constant -1.000000e+30 : f32
    %300 = vector.broadcast %cst_120 : f32 to vector<8x8xf32>
    %301 = arith.select %10, %299, %300 : vector<8x8xi1>, vector<8x8xf32>
    %cst_121 = arith.constant dense<0xFF800000> : vector<8xf32>
    %302 = vector.multi_reduction <maximumf>, %301, %cst_121 [1] : vector<8x8xf32> to vector<8xf32>
    %303 = vector.shape_cast %302 : vector<8xf32> to vector<8x1xf32>
    %304 = vector.broadcast %303 : vector<8x1xf32> to vector<8x8xf32>
    %305 = arith.subf %301, %304 : vector<8x8xf32>
    %306 = math.exp %305 : vector<8x8xf32>
    %cst_122 = arith.constant dense<0.000000e+00> : vector<8xf32>
    %307 = vector.multi_reduction <add>, %306, %cst_122 [1] : vector<8x8xf32> to vector<8xf32>
    %308 = vector.shape_cast %307 : vector<8xf32> to vector<8x1xf32>
    %309 = vector.broadcast %308 : vector<8x1xf32> to vector<8x8xf32>
    %310 = arith.divf %306, %309 : vector<8x8xf32>
    %311 = arith.truncf %310 : vector<8x8xf32> to vector<8x8xbf16>
    %cst_123 = arith.constant dense<0.000000e+00> : vector<8x8xf32>
    %312 = tpu.matmul %311, %293, %cst_123 {dimension_numbers = #tpu.dot_dimension_numbers<[1], [0], [0], [1], [0, 0, 1, 1], [], []>} : vector<8x8xbf16>, vector<8x8xbf16>, vector<8x8xf32> -> vector<8x8xf32>
    %313 = vector.extract_strided_slice %285 {offsets = [0, 8], sizes = [8, 8], strides = [1, 1]} : vector<8x32xf32> to vector<8x8xf32>
    %314 = arith.truncf %313 : vector<8x8xf32> to vector<8x8xbf16>
    %cst_124 = arith.constant dense<0.000000e+00> : vector<8x8xf32>
    %315 = tpu.matmul %314, %291, %cst_124 {dimension_numbers = #tpu.dot_dimension_numbers<[1], [1], [0], [0], [0, 0, 1, 0], [], []>} : vector<8x8xbf16>, vector<8x8xbf16>, vector<8x8xf32> -> vector<8x8xf32>
    %cst_125 = arith.constant 3.906250e-03 : f32
    %316 = vector.broadcast %cst_125 : f32 to vector<8x8xf32>
    %317 = arith.mulf %316, %15 : vector<8x8xf32>
    %318 = arith.addf %315, %317 : vector<8x8xf32>
    %cst_126 = arith.constant -1.000000e+30 : f32
    %319 = vector.broadcast %cst_126 : f32 to vector<8x8xf32>
    %320 = arith.select %10, %318, %319 : vector<8x8xi1>, vector<8x8xf32>
    %cst_127 = arith.constant dense<0xFF800000> : vector<8xf32>
    %321 = vector.multi_reduction <maximumf>, %320, %cst_127 [1] : vector<8x8xf32> to vector<8xf32>
    %322 = vector.shape_cast %321 : vector<8xf32> to vector<8x1xf32>
    %323 = vector.broadcast %322 : vector<8x1xf32> to vector<8x8xf32>
    %324 = arith.subf %320, %323 : vector<8x8xf32>
    %325 = math.exp %324 : vector<8x8xf32>
    %cst_128 = arith.constant dense<0.000000e+00> : vector<8xf32>
    %326 = vector.multi_reduction <add>, %325, %cst_128 [1] : vector<8x8xf32> to vector<8xf32>
    %327 = vector.shape_cast %326 : vector<8xf32> to vector<8x1xf32>
    %328 = vector.broadcast %327 : vector<8x1xf32> to vector<8x8xf32>
    %329 = arith.divf %325, %328 : vector<8x8xf32>
    %330 = arith.truncf %329 : vector<8x8xf32> to vector<8x8xbf16>
    %cst_129 = arith.constant dense<0.000000e+00> : vector<8x8xf32>
    %331 = tpu.matmul %330, %293, %cst_129 {dimension_numbers = #tpu.dot_dimension_numbers<[1], [0], [0], [1], [0, 0, 1, 1], [], []>} : vector<8x8xbf16>, vector<8x8xbf16>, vector<8x8xf32> -> vector<8x8xf32>
    %332 = vector.extract_strided_slice %289 {offsets = [0, 8], sizes = [8, 8], strides = [1, 1]} : vector<8x16xf32> to vector<8x8xf32>
    %333 = arith.truncf %332 : vector<8x8xf32> to vector<8x8xbf16>
    %334 = vector.extract_strided_slice %261 {offsets = [0, 8], sizes = [8, 8], strides = [1, 1]} : vector<8x16xf32> to vector<8x8xf32>
    %335 = arith.truncf %334 : vector<8x8xf32> to vector<8x8xbf16>
    %336 = vector.extract_strided_slice %285 {offsets = [0, 16], sizes = [8, 8], strides = [1, 1]} : vector<8x32xf32> to vector<8x8xf32>
    %337 = arith.truncf %336 : vector<8x8xf32> to vector<8x8xbf16>
    %cst_130 = arith.constant dense<0.000000e+00> : vector<8x8xf32>
    %338 = tpu.matmul %337, %333, %cst_130 {dimension_numbers = #tpu.dot_dimension_numbers<[1], [1], [0], [0], [0, 0, 1, 0], [], []>} : vector<8x8xbf16>, vector<8x8xbf16>, vector<8x8xf32> -> vector<8x8xf32>
    %cst_131 = arith.constant 0.000000e+00 : f32
    %339 = vector.broadcast %cst_131 : f32 to vector<8x8xf32>
    %340 = arith.mulf %339, %15 : vector<8x8xf32>
    %341 = arith.addf %338, %340 : vector<8x8xf32>
    %cst_132 = arith.constant -1.000000e+30 : f32
    %342 = vector.broadcast %cst_132 : f32 to vector<8x8xf32>
    %343 = arith.select %10, %341, %342 : vector<8x8xi1>, vector<8x8xf32>
    %cst_133 = arith.constant dense<0xFF800000> : vector<8xf32>
    %344 = vector.multi_reduction <maximumf>, %343, %cst_133 [1] : vector<8x8xf32> to vector<8xf32>
    %345 = vector.shape_cast %344 : vector<8xf32> to vector<8x1xf32>
    %346 = vector.broadcast %345 : vector<8x1xf32> to vector<8x8xf32>
    %347 = arith.subf %343, %346 : vector<8x8xf32>
    %348 = math.exp %347 : vector<8x8xf32>
    %cst_134 = arith.constant dense<0.000000e+00> : vector<8xf32>
    %349 = vector.multi_reduction <add>, %348, %cst_134 [1] : vector<8x8xf32> to vector<8xf32>
    %350 = vector.shape_cast %349 : vector<8xf32> to vector<8x1xf32>
    %351 = vector.broadcast %350 : vector<8x1xf32> to vector<8x8xf32>
    %352 = arith.divf %348, %351 : vector<8x8xf32>
    %353 = arith.truncf %352 : vector<8x8xf32> to vector<8x8xbf16>
    %cst_135 = arith.constant dense<0.000000e+00> : vector<8x8xf32>
    %354 = tpu.matmul %353, %335, %cst_135 {dimension_numbers = #tpu.dot_dimension_numbers<[1], [0], [0], [1], [0, 0, 1, 1], [], []>} : vector<8x8xbf16>, vector<8x8xbf16>, vector<8x8xf32> -> vector<8x8xf32>
    %355 = vector.extract_strided_slice %285 {offsets = [0, 24], sizes = [8, 8], strides = [1, 1]} : vector<8x32xf32> to vector<8x8xf32>
    %356 = arith.truncf %355 : vector<8x8xf32> to vector<8x8xbf16>
    %cst_136 = arith.constant dense<0.000000e+00> : vector<8x8xf32>
    %357 = tpu.matmul %356, %333, %cst_136 {dimension_numbers = #tpu.dot_dimension_numbers<[1], [1], [0], [0], [0, 0, 1, 0], [], []>} : vector<8x8xbf16>, vector<8x8xbf16>, vector<8x8xf32> -> vector<8x8xf32>
    %cst_137 = arith.constant 0.000000e+00 : f32
    %358 = vector.broadcast %cst_137 : f32 to vector<8x8xf32>
    %359 = arith.mulf %358, %15 : vector<8x8xf32>
    %360 = arith.addf %357, %359 : vector<8x8xf32>
    %cst_138 = arith.constant -1.000000e+30 : f32
    %361 = vector.broadcast %cst_138 : f32 to vector<8x8xf32>
    %362 = arith.select %10, %360, %361 : vector<8x8xi1>, vector<8x8xf32>
    %cst_139 = arith.constant dense<0xFF800000> : vector<8xf32>
    %363 = vector.multi_reduction <maximumf>, %362, %cst_139 [1] : vector<8x8xf32> to vector<8xf32>
    %364 = vector.shape_cast %363 : vector<8xf32> to vector<8x1xf32>
    %365 = vector.broadcast %364 : vector<8x1xf32> to vector<8x8xf32>
    %366 = arith.subf %362, %365 : vector<8x8xf32>
    %367 = math.exp %366 : vector<8x8xf32>
    %cst_140 = arith.constant dense<0.000000e+00> : vector<8xf32>
    %368 = vector.multi_reduction <add>, %367, %cst_140 [1] : vector<8x8xf32> to vector<8xf32>
    %369 = vector.shape_cast %368 : vector<8xf32> to vector<8x1xf32>
    %370 = vector.broadcast %369 : vector<8x1xf32> to vector<8x8xf32>
    %371 = arith.divf %367, %370 : vector<8x8xf32>
    %372 = arith.truncf %371 : vector<8x8xf32> to vector<8x8xbf16>
    %cst_141 = arith.constant dense<0.000000e+00> : vector<8x8xf32>
    %373 = tpu.matmul %372, %335, %cst_141 {dimension_numbers = #tpu.dot_dimension_numbers<[1], [0], [0], [1], [0, 0, 1, 1], [], []>} : vector<8x8xbf16>, vector<8x8xbf16>, vector<8x8xf32> -> vector<8x8xf32>
    %374 = tpu.concatenate %312, %331, %354, %373 in 1 : vector<8x8xf32>, vector<8x8xf32>, vector<8x8xf32>, vector<8x8xf32> -> vector<8x32xf32>
    %375 = arith.truncf %374 : vector<8x32xf32> to vector<8x32xbf16>
    %c1_142 = arith.constant 1 : index
    %c0_143 = arith.constant 0 : index
    %c0_144 = arith.constant 0 : index
    %376 = vector.load %arg15[%c1_142, %c0_143, %c0_144] : memref<2x32x32xbf16, #tpu.memory_space<vmem>>, vector<1x32x32xbf16>
    %377 = vector.shape_cast %376 : vector<1x32x32xbf16> to vector<32x32xbf16>
    %cst_145 = arith.constant dense<0.000000e+00> : vector<8x32xf32>
    %378 = tpu.matmul %375, %377, %cst_145 {dimension_numbers = #tpu.dot_dimension_numbers<[1], [0], [0], [1], [0, 0, 1, 1], [], []>} : vector<8x32xbf16>, vector<32x32xbf16>, vector<8x32xf32> -> vector<8x32xf32>
    %379 = arith.addf %228, %378 : vector<8x32xf32>
    %380 = vector.extract_strided_slice %230 {offsets = [2, 0], sizes = [1, 32], strides = [1, 1]} : vector<4x32xf32> to vector<1x32xf32>
    %381 = vector.extract_strided_slice %230 {offsets = [3, 0], sizes = [1, 32], strides = [1, 1]} : vector<4x32xf32> to vector<1x32xf32>
    %cst_146 = arith.constant dense<0.000000e+00> : vector<8xf32>
    %382 = vector.multi_reduction <add>, %379, %cst_146 [1] : vector<8x32xf32> to vector<8xf32>
    %383 = vector.shape_cast %382 : vector<8xf32> to vector<8x1xf32>
    %cst_147 = arith.constant 3.200000e+01 : f32
    %384 = vector.broadcast %cst_147 : f32 to vector<8x1xf32>
    %385 = arith.divf %383, %384 : vector<8x1xf32>
    %386 = vector.broadcast %385 : vector<8x1xf32> to vector<8x32xf32>
    %387 = arith.subf %379, %386 : vector<8x32xf32>
    %388 = arith.mulf %387, %387 : vector<8x32xf32>
    %cst_148 = arith.constant dense<0.000000e+00> : vector<8xf32>
    %389 = vector.multi_reduction <add>, %388, %cst_148 [1] : vector<8x32xf32> to vector<8xf32>
    %390 = vector.shape_cast %389 : vector<8xf32> to vector<8x1xf32>
    %cst_149 = arith.constant 3.200000e+01 : f32
    %391 = vector.broadcast %cst_149 : f32 to vector<8x1xf32>
    %392 = arith.divf %390, %391 : vector<8x1xf32>
    %393 = vector.broadcast %385 : vector<8x1xf32> to vector<8x32xf32>
    %394 = arith.subf %379, %393 : vector<8x32xf32>
    %cst_150 = arith.constant 9.99999974E-6 : f32
    %395 = vector.broadcast %cst_150 : f32 to vector<8x1xf32>
    %396 = arith.addf %392, %395 : vector<8x1xf32>
    %397 = math.rsqrt %396 : vector<8x1xf32>
    %398 = vector.broadcast %397 : vector<8x1xf32> to vector<8x32xf32>
    %399 = arith.mulf %394, %398 : vector<8x32xf32>
    %400 = vector.broadcast %380 : vector<1x32xf32> to vector<8x32xf32>
    %401 = arith.mulf %399, %400 : vector<8x32xf32>
    %402 = vector.broadcast %381 : vector<1x32xf32> to vector<8x32xf32>
    %403 = arith.addf %401, %402 : vector<8x32xf32>
    %404 = arith.truncf %403 : vector<8x32xf32> to vector<8x32xbf16>
    %c1_151 = arith.constant 1 : index
    %c0_152 = arith.constant 0 : index
    %c0_153 = arith.constant 0 : index
    %405 = vector.load %arg16[%c1_151, %c0_152, %c0_153] : memref<2x32x128xbf16, #tpu.memory_space<vmem>>, vector<1x32x128xbf16>
    %406 = vector.shape_cast %405 : vector<1x32x128xbf16> to vector<32x128xbf16>
    %cst_154 = arith.constant dense<0.000000e+00> : vector<8x128xf32>
    %407 = tpu.matmul %404, %406, %cst_154 {dimension_numbers = #tpu.dot_dimension_numbers<[1], [0], [0], [1], [0, 0, 1, 1], [], []>} : vector<8x32xbf16>, vector<32x128xbf16>, vector<8x128xf32> -> vector<8x128xf32>
    %c1_155 = arith.constant 1 : index
    %c0_156 = arith.constant 0 : index
    %c0_157 = arith.constant 0 : index
    %408 = vector.load %arg17[%c1_155, %c0_156, %c0_157] : memref<2x1x128xf32, #tpu.memory_space<vmem>>, vector<1x1x128xf32>
    %409 = vector.shape_cast %408 : vector<1x1x128xf32> to vector<1x128xf32>
    %410 = vector.broadcast %409 : vector<1x128xf32> to vector<8x128xf32>
    %411 = arith.addf %407, %410 : vector<8x128xf32>
    %412 = arith.mulf %411, %411 : vector<8x128xf32>
    %413 = arith.mulf %411, %412 : vector<8x128xf32>
    %cst_158 = arith.constant 4.471500e-02 : f32
    %414 = vector.broadcast %cst_158 : f32 to vector<8x128xf32>
    %415 = arith.mulf %414, %413 : vector<8x128xf32>
    %416 = arith.addf %411, %415 : vector<8x128xf32>
    %cst_159 = arith.constant 0.797884583 : f32
    %417 = vector.broadcast %cst_159 : f32 to vector<8x128xf32>
    %418 = arith.mulf %417, %416 : vector<8x128xf32>
    %419 = math.tanh %418 : vector<8x128xf32>
    %cst_160 = arith.constant 1.000000e+00 : f32
    %420 = vector.broadcast %cst_160 : f32 to vector<8x128xf32>
    %421 = arith.addf %420, %419 : vector<8x128xf32>
    %cst_161 = arith.constant 5.000000e-01 : f32
    %422 = vector.broadcast %cst_161 : f32 to vector<8x128xf32>
    %423 = arith.mulf %422, %421 : vector<8x128xf32>
    %424 = arith.mulf %411, %423 : vector<8x128xf32>
    %425 = arith.truncf %424 : vector<8x128xf32> to vector<8x128xbf16>
    %c1_162 = arith.constant 1 : index
    %c0_163 = arith.constant 0 : index
    %c0_164 = arith.constant 0 : index
    %426 = vector.load %arg18[%c1_162, %c0_163, %c0_164] : memref<2x128x32xbf16, #tpu.memory_space<vmem>>, vector<1x128x32xbf16>
    %427 = vector.shape_cast %426 : vector<1x128x32xbf16> to vector<128x32xbf16>
    %cst_165 = arith.constant dense<0.000000e+00> : vector<8x32xf32>
    %428 = tpu.matmul %425, %427, %cst_165 {dimension_numbers = #tpu.dot_dimension_numbers<[1], [0], [0], [1], [0, 0, 1, 1], [], []>} : vector<8x128xbf16>, vector<128x32xbf16>, vector<8x32xf32> -> vector<8x32xf32>
    %429 = arith.addf %379, %428 : vector<8x32xf32>
    %c1_166 = arith.constant 1 : index
    %c0_167 = arith.constant 0 : index
    %c0_168 = arith.constant 0 : index
    %430 = vector.load %arg19[%c1_166, %c0_167, %c0_168] : memref<2x1x32xf32, #tpu.memory_space<vmem>>, vector<1x1x32xf32>
    %431 = vector.shape_cast %430 : vector<1x1x32xf32> to vector<1x32xf32>
    %432 = vector.broadcast %431 : vector<1x32xf32> to vector<8x32xf32>
    %433 = arith.addf %429, %432 : vector<8x32xf32>
    %c0_169 = arith.constant 0 : index
    %c0_170 = arith.constant 0 : index
    %434 = vector.load %arg20[%c0_169, %c0_170] : memref<2x32xf32, #tpu.memory_space<vmem>>, vector<1x32xf32>
    %c1_171 = arith.constant 1 : index
    %c0_172 = arith.constant 0 : index
    %435 = vector.load %arg20[%c1_171, %c0_172] : memref<2x32xf32, #tpu.memory_space<vmem>>, vector<1x32xf32>
    %cst_173 = arith.constant dense<0.000000e+00> : vector<8xf32>
    %436 = vector.multi_reduction <add>, %433, %cst_173 [1] : vector<8x32xf32> to vector<8xf32>
    %437 = vector.shape_cast %436 : vector<8xf32> to vector<8x1xf32>
    %cst_174 = arith.constant 3.200000e+01 : f32
    %438 = vector.broadcast %cst_174 : f32 to vector<8x1xf32>
    %439 = arith.divf %437, %438 : vector<8x1xf32>
    %440 = vector.broadcast %439 : vector<8x1xf32> to vector<8x32xf32>
    %441 = arith.subf %433, %440 : vector<8x32xf32>
    %442 = arith.mulf %441, %441 : vector<8x32xf32>
    %cst_175 = arith.constant dense<0.000000e+00> : vector<8xf32>
    %443 = vector.multi_reduction <add>, %442, %cst_175 [1] : vector<8x32xf32> to vector<8xf32>
    %444 = vector.shape_cast %443 : vector<8xf32> to vector<8x1xf32>
    %cst_176 = arith.constant 3.200000e+01 : f32
    %445 = vector.broadcast %cst_176 : f32 to vector<8x1xf32>
    %446 = arith.divf %444, %445 : vector<8x1xf32>
    %447 = vector.broadcast %439 : vector<8x1xf32> to vector<8x32xf32>
    %448 = arith.subf %433, %447 : vector<8x32xf32>
    %cst_177 = arith.constant 9.99999974E-6 : f32
    %449 = vector.broadcast %cst_177 : f32 to vector<8x1xf32>
    %450 = arith.addf %446, %449 : vector<8x1xf32>
    %451 = math.rsqrt %450 : vector<8x1xf32>
    %452 = vector.broadcast %451 : vector<8x1xf32> to vector<8x32xf32>
    %453 = arith.mulf %448, %452 : vector<8x32xf32>
    %454 = vector.broadcast %434 : vector<1x32xf32> to vector<8x32xf32>
    %455 = arith.mulf %453, %454 : vector<8x32xf32>
    %456 = vector.broadcast %435 : vector<1x32xf32> to vector<8x32xf32>
    %457 = arith.addf %455, %456 : vector<8x32xf32>
    %458 = arith.truncf %457 : vector<8x32xf32> to vector<8x32xbf16>
    %c0_178 = arith.constant 0 : index
    %c0_179 = arith.constant 0 : index
    %459 = vector.load %arg21[%c0_178, %c0_179] : memref<32x256xbf16, #tpu.memory_space<vmem>>, vector<32x256xbf16>
    %cst_180 = arith.constant dense<0.000000e+00> : vector<8x256xf32>
    %460 = tpu.matmul %458, %459, %cst_180 {dimension_numbers = #tpu.dot_dimension_numbers<[1], [0], [0], [1], [0, 0, 1, 1], [], []>} : vector<8x32xbf16>, vector<32x256xbf16>, vector<8x256xf32> -> vector<8x256xf32>
    %c0_181 = arith.constant 0 : index
    %c0_182 = arith.constant 0 : index
    %461 = vector.load %arg22[%c0_181, %c0_182] : memref<8x256xf32, #tpu.memory_space<vmem>>, vector<8x256xf32>
    tpu.vector_store %arg22[%c0_181, %c0_182], %460 {strides = array<i32>} : memref<8x256xf32, #tpu.memory_space<vmem>>, vector<8x256xf32>,
    return
  }
  func.func @transform_0(%arg0: i32) -> (i32, i32) {
    %c0_i32 = arith.constant 0 : i32
    %c0_i32_0 = arith.constant 0 : i32
    return %arg0, %c0_i32 : i32, i32
  }
  func.func @transform_1(%arg0: i32) -> (i32, i32) {
    %c0_i32 = arith.constant 0 : i32
    %c0_i32_0 = arith.constant 0 : i32
    %c0_i32_1 = arith.constant 0 : i32
    return %c0_i32, %c0_i32_0 : i32, i32
  }
  func.func @transform_2(%arg0: i32) -> (i32, i32) {
    %c0_i32 = arith.constant 0 : i32
    %c0_i32_0 = arith.constant 0 : i32
    %c0_i32_1 = arith.constant 0 : i32
    return %c0_i32, %c0_i32_0 : i32, i32
  }
  func.func @transform_3(%arg0: i32) -> (i32, i32) {
    %c0_i32 = arith.constant 0 : i32
    %c0_i32_0 = arith.constant 0 : i32
    %c0_i32_1 = arith.constant 0 : i32
    return %c0_i32, %c0_i32_0 : i32, i32
  }
  func.func @transform_4(%arg0: i32) -> (i32, i32) {
    %c0_i32 = arith.constant 0 : i32
    %c0_i32_0 = arith.constant 0 : i32
    %c0_i32_1 = arith.constant 0 : i32
    return %c0_i32, %c0_i32_0 : i32, i32
  }
  func.func @transform_5(%arg0: i32) -> (i32, i32) {
    %c0_i32 = arith.constant 0 : i32
    %c0_i32_0 = arith.constant 0 : i32
    %c0_i32_1 = arith.constant 0 : i32
    return %c0_i32, %c0_i32_0 : i32, i32
  }
  func.func @transform_6(%arg0: i32) -> (i32, i32) {
    %c0_i32 = arith.constant 0 : i32
    %c0_i32_0 = arith.constant 0 : i32
    %c0_i32_1 = arith.constant 0 : i32
    return %c0_i32, %c0_i32_0 : i32, i32
  }
  func.func @transform_7(%arg0: i32) -> (i32, i32) {
    %c0_i32 = arith.constant 0 : i32
    %c0_i32_0 = arith.constant 0 : i32
    %c0_i32_1 = arith.constant 0 : i32
    return %c0_i32, %c0_i32_0 : i32, i32
  }
  func.func @transform_8(%arg0: i32) -> (i32, i32) {
    %c0_i32 = arith.constant 0 : i32
    %c0_i32_0 = arith.constant 0 : i32
    %c0_i32_1 = arith.constant 0 : i32
    return %c0_i32, %c0_i32_0 : i32, i32
  }
  func.func @transform_9(%arg0: i32) -> (i32, i32) {
    %c0_i32 = arith.constant 0 : i32
    %c0_i32_0 = arith.constant 0 : i32
    %c0_i32_1 = arith.constant 0 : i32
    return %c0_i32, %c0_i32_0 : i32, i32
  }
  func.func @transform_10(%arg0: i32) -> (i32, i32, i32) {
    %c0_i32 = arith.constant 0 : i32
    %c0_i32_0 = arith.constant 0 : i32
    %c0_i32_1 = arith.constant 0 : i32
    %c0_i32_2 = arith.constant 0 : i32
    return %c0_i32, %c0_i32_0, %c0_i32_1 : i32, i32, i32
  }
  func.func @transform_11(%arg0: i32) -> (i32, i32, i32) {
    %c0_i32 = arith.constant 0 : i32
    %c0_i32_0 = arith.constant 0 : i32
    %c0_i32_1 = arith.constant 0 : i32
    %c0_i32_2 = arith.constant 0 : i32
    return %c0_i32, %c0_i32_0, %c0_i32_1 : i32, i32, i32
  }
  func.func @transform_12(%arg0: i32) -> (i32, i32, i32) {
    %c0_i32 = arith.constant 0 : i32
    %c0_i32_0 = arith.constant 0 : i32
    %c0_i32_1 = arith.constant 0 : i32
    %c0_i32_2 = arith.constant 0 : i32
    return %c0_i32, %c0_i32_0, %c0_i32_1 : i32, i32, i32
  }
  func.func @transform_13(%arg0: i32) -> (i32, i32, i32) {
    %c0_i32 = arith.constant 0 : i32
    %c0_i32_0 = arith.constant 0 : i32
    %c0_i32_1 = arith.constant 0 : i32
    %c0_i32_2 = arith.constant 0 : i32
    return %c0_i32, %c0_i32_0, %c0_i32_1 : i32, i32, i32
  }
  func.func @transform_14(%arg0: i32) -> (i32, i32, i32) {
    %c0_i32 = arith.constant 0 : i32
    %c0_i32_0 = arith.constant 0 : i32
    %c0_i32_1 = arith.constant 0 : i32
    %c0_i32_2 = arith.constant 0 : i32
    return %c0_i32, %c0_i32_0, %c0_i32_1 : i32, i32, i32
  }
  func.func @transform_15(%arg0: i32) -> (i32, i32, i32) {
    %c0_i32 = arith.constant 0 : i32
    %c0_i32_0 = arith.constant 0 : i32
    %c0_i32_1 = arith.constant 0 : i32
    %c0_i32_2 = arith.constant 0 : i32
    return %c0_i32, %c0_i32_0, %c0_i32_1 : i32, i32, i32
  }
  func.func @transform_16(%arg0: i32) -> (i32, i32, i32) {
    %c0_i32 = arith.constant 0 : i32
    %c0_i32_0 = arith.constant 0 : i32
    %c0_i32_1 = arith.constant 0 : i32
    %c0_i32_2 = arith.constant 0 : i32
    return %c0_i32, %c0_i32_0, %c0_i32_1 : i32, i32, i32
  }
  func.func @transform_17(%arg0: i32) -> (i32, i32, i32) {
    %c0_i32 = arith.constant 0 : i32
    %c0_i32_0 = arith.constant 0 : i32
    %c0_i32_1 = arith.constant 0 : i32
    %c0_i32_2 = arith.constant 0 : i32
    return %c0_i32, %c0_i32_0, %c0_i32_1 : i32, i32, i32
  }
  func.func @transform_18(%arg0: i32) -> (i32, i32, i32) {
    %c0_i32 = arith.constant 0 : i32
    %c0_i32_0 = arith.constant 0 : i32
    %c0_i32_1 = arith.constant 0 : i32
    %c0_i32_2 = arith.constant 0 : i32
    return %c0_i32, %c0_i32_0, %c0_i32_1 : i32, i32, i32
  }
  func.func @transform_19(%arg0: i32) -> (i32, i32) {
    %c0_i32 = arith.constant 0 : i32
    %c0_i32_0 = arith.constant 0 : i32
    %c0_i32_1 = arith.constant 0 : i32
    return %c0_i32, %c0_i32_0 : i32, i32
  }
  func.func @transform_20(%arg0: i32) -> (i32, i32) {
    %c0_i32 = arith.constant 0 : i32
    %c0_i32_0 = arith.constant 0 : i32
    %c0_i32_1 = arith.constant 0 : i32
    return %c0_i32, %c0_i32_0 : i32, i32
  }
  func.func @transform_21(%arg0: i32) -> (i32, i32) {
    %c0_i32 = arith.constant 0 : i32
    %c0_i32_0 = arith.constant 0 : i32
    return %arg0, %c0_i32 : i32, i32
  }
}

</mosaic_0001>

<bundles_post_ra>
// kernel: gemini_forward.2
= control target key start
LH: loop header
LB: loop body
LE: loop exit
PB: predicated region body
PF: predicated region fallthrough
CT: control target
= control target key end

     0   :  { %s4754_s0 = inlined_call_operand.vmem [shape: s32[16,1], index: 0, kind: input, shape index: {}]   ;;  %s4755_s1 = inlined_call_operand.vmem [shape: f32[256,32], index: 1, kind: input, shape index: {}]   ;;  %s4756_s2 = inlined_call_operand.vmem [shape: f32[8,32], index: 2, kind: input, shape index: {}]   ;;  %s4757_s3 = inlined_call_operand.vmem [shape: f32[8,32], index: 3, kind: input, shape index: {}]   ;;  %s4758_s4 = inlined_call_operand.vmem [shape: f32[8,16], index: 4, kind: input, shape index: {}]   ;;  %s4759_s5 = inlined_call_operand.vmem [shape: f32[8,16], index: 5, kind: input, shape index: {}]   ;;  %s4760_s6 = inlined_call_operand.vmem [shape: f32[32,32], index: 6, kind: input, shape index: {}]   ;;  %s4761_s7 = inlined_call_operand.vmem [shape: f32[16,16], index: 7, kind: input, shape index: {}]   ;;  %s4762_s8 = inlined_call_operand.vmem [shape: f32[32,32], index: 8, kind: input, shape index: {}]   ;;  %s4763_s9 = inlined_call_operand.vmem [shape: f32[16,16], index: 9, kind: input, shape index: {}]   ;;  %s4764_s10 = inlined_call_operand.vmem [shape: f32[2,4,32], index: 10, kind: input, shape index: {}]   ;;  %s4765_s11 = inlined_call_operand.vmem [shape: bf16[2,32,64], index: 11, kind: input, shape index: {}]   ;;  %s4766_s12 = inlined_call_operand.vmem [shape: f32[2,1,32], index: 12, kind: input, shape index: {}]   ;;  %s4767_s13 = inlined_call_operand.vmem [shape: f32[2,1,16], index: 13, kind: input, shape index: {}]   ;;  %s4768_s14 = inlined_call_operand.vmem [shape: bf16[2,32,32], index: 14, kind: input, shape index: {}]   ;;  %s4769_s15 = inlined_call_operand.vmem [shape: bf16[2,32,128], index: 15, kind: input, shape index: {}]   ;;  %s4770_s16 = inlined_call_operand.vmem [shape: f32[2,1,128], index: 16, kind: input, shape index: {}]   ;;  %s4771_s17 = inlined_call_operand.vmem [shape: bf16[2,128,32], index: 17, kind: input, shape index: {}]   ;;  %s4772_s18 = inlined_call_operand.vmem [shape: f32[2,1,32], index: 18, kind: input, shape index: {}]   ;;  %s4773_s19 = inlined_call_operand.vmem [shape: f32[2,32], index: 19, kind: input, shape index: {}]   ;;  %s4774_s20 = inlined_call_operand.vmem [shape: bf16[32,256], index: 20, kind: input, shape index: {}]   ;;  %s4775_s21 = inlined_call_operand.vmem [shape: f32[16,256], index: 21, kind: output, shape index: {}]  }
   0x1   :  { %4784 = sst [smem:[#allocation3_spill]] %s4754_s0 }
   0x2   :  { %4785 = sst [smem:[#allocation4_spill]] %s4755_s1 }
   0x3   :  { %4786 = sst [smem:[#allocation5_spill]] %s4756_s2  ;;  %s4062_s2 = smov 0  }
   0x4   :  { %4787 = sst [smem:[#allocation6_spill]] %s4757_s3 }
   0x5   :  { %4788 = sst [smem:[#allocation7_spill]] %s4758_s4 }
   0x6   :  { %4789 = sst [smem:[#allocation8_spill]] %s4759_s5 }
   0x7 LB: > { %4790 = sst [smem:[#allocation2_spill]] %s3934_s2  ;;  %s3234_s25 = sadd.s32 4294967295, %s3934_s2   ;;  %s3934_s2 = sphi %s4062_s2, %s31_s2  }
   0x8   : > { %p3238_p0 = scmp.ge.s32.totalorder %s3934_s2, 1  ;;  %p586_p1 = scmp.lt.s32.totalorder %s3934_s2, 3 }
   0xa   : > { %p587_p2 = pnand %p3238_p0, %p586_p1 }
   0xb   : > { %p645_p3 = scmp.lt.s32.totalorder (!%p587_p2), %s3234_s25, 1  ;;  %s4791_s3 = sld [smem:[#allocation4_spill]] (!%p587_p2)  ;;  %v3936_v3 = vmov (!%p587_p2), 0   ;;  %v655_v50 = vlaneseq (!%p587_p2)  ;;  %v3937_v54 = vmov (!%p587_p2), 1.0   ;;  %vm796_vm2 = vcmask (!%p587_p2), 261120  }
   0xc   : > { %590 = sbr.rel (%p587_p2) target bundleno = 8828 (0x227c), region = 104  ;;  %3839 = vset.pattern.permute.xlu0 (!%p587_p2), %v3936_v3  ;;  %s4792_s24 = sld [smem:[#allocation3_spill]] (!%p587_p2)  ;;  %vm3939_vm3 = vmmov (!%p587_p2), 0   ;;  %vm967_vm4 = vcmask (!%p587_p2), 130048   ;;  %vm1225_vm5 = vcmask (!%p587_p2), 64512   ;;  %vm1291_vm7 = vcmask (!%p587_p2), 1043456  }
   0xd   : > { %v4173_v51 = vand.u32 (!%p587_p2), 127, %v655_v50  ;;  %s3941_s1 = smov (!%p587_p2), 96   ;;  %s3942_s27 = smov (!%p587_p2), 32   ;;  %vm1665_vm8 = vcmask (!%p587_p2), 195584  }
   0xe   : > { %s4793_s4 = sld [smem:[#allocation5_spill]] (!%p587_p2)  ;;  %s4796_s29 = sld [smem:[#allocation8_spill]] (!%p587_p2) }
   0xf   : > { %v657_v52 = vadd.s32 (!%p587_p2), 128, %v4173_v51  ;;  %s4783_s0 = smov (!%p587_p2), 80   ;;  %s4782_s30 = smov (!%p587_p2), 112  }
  0x10   : > { %s3946_s5 = smov (!%p587_p2), 104   ;;  %s4781_s23 = smov (!%p587_p2), 72  }
  0x11   : > { %v684_v0 = vld [vmem:[%s4791_s3 + $0x80] sm:$0xff] (!%p587_p2)  ;;  %v685_v1 = vld [vmem:[%s4791_s3 + $0x88] sm:$0xff] (!%p587_p2)  ;;  %v686_v6 = vld [vmem:[%s4791_s3 + $0x90] sm:$0xff] (!%p587_p2)  ;;  %s4780_s28 = smov (!%p587_p2), 8   ;;  %s4804_s2 = smov (!%p587_p2), 24  }
  0x12   : > { %v668_v2 = vld [vmem:[%s4791_s3] sm:$0xff] (!%p587_p2)  ;;  %v3747_v4 = vpack.c.bf16 (!%p587_p2), %v685_v1, %v684_v0  ;;  %v669_v5 = vld [vmem:[%s4791_s3 + $0x8] sm:$0xff] (!%p587_p2)  ;;  %v687_v7 = vld [vmem:[%s4791_s3 + $0x98] sm:$0xff] (!%p587_p2)  ;;  %v3938_v1 = vmov (!%p587_p2), 0.0  }
  0x13   : > { %s4807_s25 = smov (!%p645_p3, %s3234_s25), 1  ;;  %v3749_v8 = vpack.c.bf16 %v669_v5, %v668_v2  ;;  %v3751_v9 = vpack.c.bf16 %v687_v7, %v686_v6  ;;  %v670_v10 = vld [vmem:[%s4791_s3 + $0x10] sm:$0xff]  ;;  %v671_v11 = vld [vmem:[%s4791_s3 + $0x18] sm:$0xff]  ;;  %v688_v12 = vld [vmem:[%s4791_s3 + $0xa0] sm:$0xff]  ;;  %3491 = vmatprep.subr.bf16.mxu1 %v3938_v1  ;;  %3495 = vmatprep.mubr.msk.bf16.mxu1 %vm3939_vm3, %v3938_v1 }
  0x14   : > { %3748 = vmatprep.subr.bf16.mxu0 %v3747_v4  ;;  %v689_v13 = vld [vmem:[%s4791_s3 + $0xa8] sm:$0xff]  ;;  %s3239_s22 = sshll.u32 %s4807_s25, 3  ;;  %v3753_v14 = vpack.c.bf16 %v671_v11, %v670_v10  ;;  %v672_v16 = vld [vmem:[%s4791_s3 + $0x20] sm:$0xff]  ;;  %v690_v19 = vld [vmem:[%s4791_s3 + $0xb0] sm:$0xff]  ;;  %v3940_v4 = vmov 0.0|0.0  }
  0x15   : > { %3750 = vmatpush3.bf16.msra.mxu0 %v3749_v8  ;;  %s648_s26 = scalar_lea.vmem %s4792_s24, %s3239_s22  ;;  %v3755_v15 = vpack.c.bf16 %v689_v13, %v688_v12  ;;  %v673_v17 = vld [vmem:[%s4791_s3 + $0x28] sm:$0xff]  ;;  %v691_v20 = vld [vmem:[%s4791_s3 + $0xb8] sm:$0xff]  ;;  %v674_v23 = vld [vmem:[%s4791_s3 + $0x30] sm:$0xff]  ;;  %v4197_v8 = vshrl.u32 %v655_v50, 7  ;;  %s4794_s22 = sld [smem:[#allocation6_spill]] }
  0x16   : > { %3752 = vmatprep.subr.bf16.mxu0 %v3751_v9  ;;  %v658_v18 = vld [vmem:[%s648_s26] sm:$0xff]  ;;  %v3757_v21 = vpack.c.bf16 %v673_v17, %v672_v16  ;;  %v3759_v22 = vpack.c.bf16 %v691_v20, %v690_v19  ;;  %v675_v24 = vld [vmem:[%s4791_s3 + $0x38] sm:$0xff]  ;;  %v693_v26 = vld [vmem:[%s4791_s3 + $0xc8] sm:$0xff]  ;;  %s4795_s26 = sld [smem:[#allocation7_spill]]  ;;  %s4779_s24 = smov 16  }
  0x17   : > { %660 = vperm.xlu0 %3839, %v658_v18   ;;  %v692_v25 = vld [vmem:[%s4791_s3 + $0xc0] sm:$0xff]  ;;  %v677_v28 = vld [vmem:[%s4791_s3 + $0x48] sm:$0xff]  ;;  %v3761_v29 = vpack.c.bf16 %v675_v24, %v674_v23  ;;  %v694_v30 = vld [vmem:[%s4791_s3 + $0xd0] sm:$0xff]  ;;  %v813_v9 = vsub.s32 0, %v4197_v8  ;;  %v818_v11 = vsub.s32 1, %v4197_v8  ;;  %vm4344_vm6 = vcmp.le.s32.totalorder %v4173_v51, %v4197_v8 }
  0x18   : > { %v676_v27 = vld [vmem:[%s4791_s3 + $0x40] sm:$0xff]  ;;  %v695_v31 = vld [vmem:[%s4791_s3 + $0xd8] sm:$0xff]  ;;  %v3763_v32 = vpack.c.bf16 %v693_v26, %v692_v25  ;;  %v678_v33 = vld [vmem:[%s4791_s3 + $0x50] sm:$0xff] }
  0x19   : > { %3754 = vmatpush3.bf16.msra.mxu0 %v3753_v14  ;;  %v679_v34 = vld [vmem:[%s4791_s3 + $0x58] sm:$0xff]  ;;  %v3765_v35 = vpack.c.bf16 %v677_v28, %v676_v27  ;;  %v696_v36 = vld [vmem:[%s4791_s3 + $0xe0] sm:$0xff]  ;;  %v697_v37 = vld [vmem:[%s4791_s3 + $0xe8] sm:$0xff]  ;;  %v3767_v38 = vpack.c.bf16 %v695_v31, %v694_v30 }
  0x1a   : > { %3756 = vmatprep.subr.bf16.mxu0 %v3755_v15  ;;  %v680_v39 = vld [vmem:[%s4791_s3 + $0x60] sm:$0xff]  ;;  %v681_v40 = vld [vmem:[%s4791_s3 + $0x68] sm:$0xff]  ;;  %v3769_v41 = vpack.c.bf16 %v679_v34, %v678_v33  ;;  %v698_v42 = vld [vmem:[%s4791_s3 + $0xf0] sm:$0xff]  ;;  %v3771_v44 = vpack.c.bf16 %v697_v37, %v696_v36 }
  0x1b   : > { %v699_v43 = vld [vmem:[%s4791_s3 + $0xf8] sm:$0xff]  ;;  %v682_v45 = vld [vmem:[%s4791_s3 + $0x70] sm:$0xff]  ;;  %v3773_v47 = vpack.c.bf16 %v681_v40, %v680_v39  ;;  %v3840_v0 = vld [vmem:[%s4765_s11] sm:$0xff]  }
  0x1c   : > { %v683_v46 = vld [vmem:[%s4791_s3 + $0x78] sm:$0xff]  ;;  %v3775_v48 = vpack.c.bf16 %v699_v43, %v698_v42  ;;  %3492 = vmatpush3.bf16.msra.mxu1 %v3840_v0  ;;  %v3841_v2 = vld [vmem:[%s4765_s11 + $0x8] sm:$0xff]   ;;  %v4203_v10 = vld [vmem:[%s4764_s10] sm:$0xf] }
  0x1d   : > { %3758 = vmatpush3.bf16.msra.mxu0 %v3757_v21  ;;  %v3777_v49 = vpack.c.bf16 %v683_v46, %v682_v45  ;;  %3493 = vmatprep.subr.bf16.mxu1 %v3938_v1  ;;  %v814_v12 = vrot.slane %v4203_v10, %v813_v9  ;;  %v819_v15 = vrot.slane %v4203_v10, %v818_v11  ;;  %v789_v17 = vld [vmem:[%s4762_s8] sm:$0xff]  ;;  %v790_v18 = vld [vmem:[%s4762_s8 + $0x8] sm:$0xff]  ;;  %v792_v23 = vld [vmem:[%s4762_s8 + $0x18] sm:$0xff] }
  0x1e   : > { %3760 = vmatprep.subr.bf16.mxu0 %v3759_v22  ;;  %v4218_v20 = vpack.c.bf16 %v790_v18, %v789_v17  ;;  %v791_v22 = vld [vmem:[%s4762_s8 + $0x10] sm:$0xff]  ;;  %v793_v25 = vld [vmem:[%s4763_s9] sm:$0xff]  ;;  %v794_v26 = vld [vmem:[%s4763_s9 + $0x8] sm:$0xff] }
  0x1f   : > { %v4231_v24 = vpack.c.bf16 %v792_v23, %v791_v22  ;;  %v4243_v28 = vpack.c.bf16 %v794_v26, %v793_v25  ;;  %v783_v33 = vld [vmem:[%s4760_s6] sm:$0xff]  ;;  %v784_v34 = vld [vmem:[%s4760_s6 + $0x8] sm:$0xff]  ;;  %v785_v36 = vld [vmem:[%s4760_s6 + $0x10] sm:$0xff] }
  0x20   : > { %3494 = vmatpush3.bf16.msra.mxu1 %v3841_v2  ;;  %v786_v37 = vld [vmem:[%s4760_s6 + $0x18] sm:$0xff]  ;;  %v787_v50 = vld [vmem:[%s4761_s7] sm:$0xff] }
  0x21   : > { %3762 = vmatpush3.bf16.msra.mxu0 %v3761_v29  ;;  %3779 = vmatprep.subr.bf16.mxu1 %v3940_v4  ;;  %v4269_v39 = vpack.c.bf16 %v786_v37, %v785_v36 }
  0x22   : > { %3764 = vmatprep.subr.bf16.mxu0 %v3763_v32 }
  0x25   : > { %3766 = vmatpush3.bf16.msra.mxu0 %v3765_v35  ;;  %v4259_v35 = vpack.c.bf16 %v784_v34, %v783_v33 }
  0x26   : > { %3768 = vmatprep.subr.bf16.mxu0 %v3767_v38 }
  0x29   : > { %3770 = vmatpush3.bf16.msra.mxu0 %v3769_v41 }
  0x2a   : > { %3772 = vmatprep.subr.bf16.mxu0 %v3771_v44  ;;  %v3251_v44 = vld [vmem:[%s4766_s12] ss:$0 sm:$0xff] }
  0x2d   : > { %3774 = vmatpush3.bf16.msra.mxu0 %v3773_v47 }
  0x2e   : > { %3776 = vmatprep.subr.bf16.mxu0 %v3775_v48 }
  0x31   : > { %3778 = vmatpush3.bf16.msra.mxu0 %v3777_v49 }
  0x32   : > { %3553 = vmatprep.subr.bf16.mxu0 %v3938_v1 }
  0x96   : > { %v661_v53 = vpop.permute.xlu0 %660 }
  0x97   : > { %vm662_vm0 = vcmp.eq.s32.totalorder %v4173_v51, %v661_v53  ;;  %vm663_vm1 = vcmp.eq.s32.totalorder %v657_v52, %v661_v53  ;;  %v788_v52 = vld [vmem:[%s4761_s7 + $0x8] sm:$0xff] }
  0x98   : > { %3244 = vmatprep.mubr.msk.f32.mxu0 %vm663_vm1, %v3937_v54  ;;  %v4289_v53 = vpack.c.bf16 %v788_v52, %v787_v50 }
  0x99   : > { %3245 = vmatmul.mubr.msk.f32.vlgmr.msra.gmra.mrb[0].mxu0 %vm662_vm0, %v3937_v54 }
  0x9a   : > { %3555 = vmatprep.mubr.msk.bf16.mxu0 %vm3939_vm3, %v3938_v1 }
 0x16c   : > { %v3388_v55 = vpop.f32.mrb[0].mxu0 }
 0x16d   : > { %v3389_v56 = vpop.f32.mrb[1].mxu0 }
 0x16e   : > { %v4177_v57 = vadd.f32 %v3389_v56, %v3388_v55  ;;  %v3253_v55 = vld [vmem:[%s4767_s13] ss:$0 sm:$0xff] }
 0x16f   : > { %v4301_v56 = vld [vmem:[%s4793_s4] sm:$0xff]  ;;  %s3944_s4 = smov 88  }
 0x170   : > { %v797_v58 = vsel %vm796_vm2, %v4177_v57, 0.0 }
 0x171   : > { %798 = vadd.xlane.f32.xlu0 %v797_v58  ;;  %v4306_v58 = vld [vmem:[%s4794_s22] sm:$0xff]  ;;  %s3947_s22 = smov 120  }
 0x1fe   : > { %v799_v59 = vpop.xlane.xlu0 %798 }
 0x1ff   : > { %v801_v60 = vmul.f32 0.03125, %v799_v59 }
 0x201   : > { %v802_v61 = vsub.f32 %v4177_v57, %v801_v60 }
 0x203   : > { %v803_v62 = vmul.f32 %v802_v61, %v802_v61 }
 0x205   : > { %v804_v63 = vsel %vm796_vm2, %v803_v62, 0.0 }
 0x206   : > { %805 = vadd.xlane.f32.xlu1 %v804_v63 }
 0x293   : > { %v806_v5 = vpop.xlane.xlu1 %805 }
 0x294   : > { %v807_v6 = vmul.f32 0.03125, %v806_v5 }
 0x296   : > { %v808_v7 = vadd.f32 1e-05, %v807_v6 }
 0x298   : > { %3874 = vrsqrt.f32 %v808_v7  ;;  %v781_v7 = vld [vmem:[%s4795_s26] sm:$0xff]  ;;  %s4778_s26 = smov 24  }
 0x2a2   : > { %v3875_v13 = vpop.eup %3874 }
 0x2a3   : > { %v810_v14 = vmul.f32 %v3875_v13, %v802_v61  ;;  %v4322_v13 = vld [vmem:[%s4796_s29] sm:$0xff] }
 0x2a5   : > { %v815_v16 = vmul.f32 %v814_v12, %v810_v14 }
 0x2a7   : > { %v820_v19 = vadd.f32 %v819_v15, %v815_v16 }
 0x2a9   : > { %v821_v21 = vpack.c.bf16 %v820_v19, %v820_v19 }
 0x2ab   : > { %3496 = vmatmul.mubr.msk.bf16.vlgmr.msra.gmra.mrb[0].mxu1 %vm796_vm2, %v821_v21 }
 0x2ac   : > { %3781 = vmatpush3.bf16.msra.mxu1 %v4218_v20  ;;  %3507 = vmatprep.mubr.msk.f32.mxu1 %vm3939_vm3, %v3938_v1 }
 0x2ad   : > { %3782 = vmatprep.subr.bf16.mxu1 %v3940_v4 }
 0x2b0   : > { %3784 = vmatpush3.bf16.msra.mxu1 %v4231_v24 }
 0x2b1   : > { %3785 = vmatprep.subr.bf16.mxu1 %v3940_v4 }
 0x37e   : > { %v4241_v27 = vpop.f32.mrb[0].mxu1 }
 0x37f   : > { %v3497_v29 = vpop.f32.mrb[1].mxu1  ;;  %v881_v30 = vmul.f32 %v4241_v27, %v4241_v27 }
 0x380   : > { %v878_v31 = vpop.f32.mrb[2].mxu1  ;;  %v773_v29 = vsub.s32 %v4173_v51, %v4197_v8 }
 0x381   : > { %965 = vrot.lane.b32.xlu1 %v881_v30, %s3941_s1  ;;  %v3498_v32 = vpop.f32.mrb[3].mxu1  ;;  %3508 = vmatmul.mubr.msk.f32.vlgmr.msra.gmra.mrb[4].mxu1 %vm796_vm2, %v881_v30 }
 0x382   : > { %3787 = vmatpush3.bf16.msra.mxu1 %v4243_v28  ;;  %3514 = vmatprep.mubr.msk.f32.mxu1 %vm3939_vm3, %v3938_v1  ;;  %v775_v30 = vsub.s32 0, %v773_v29 }
 0x383   : > { %3788 = vmatprep.subr.bf16.mxu1 %v3940_v4 }
 0x384   : > { %v3246_v31 = vmin.u32 %v775_v30, %v773_v29 }
 0x386   : > { %v777_v32 = vcvt.s32.f32 %v3246_v31 }
 0x388   : > { %v4337_v33 = vsub.f32 0.0, %v777_v32 }
 0x38a   : > { %v4340_v34 = vmul.f32 0.0625, %v4337_v33 }
 0x3f3   : > { %v966_v38 = vpop.permute.xlu1 %965 }
 0x3f4   : > { %3515 = vmatmul.mubr.msk.f32.vlgmr.msra.gmra.mrb[6].mxu1 %vm967_vm4, %v966_v38 }
 0x3f5   : > { %3790 = vmatpush3.bf16.msra.mxu1 %v4259_v35  ;;  %3525 = vmatprep.mubr.msk.f32.mxu1 %vm3939_vm3, %v3938_v1 }
 0x3f6   : > { %3791 = vmatprep.subr.bf16.mxu1 %v3940_v4 }
 0x3f9   : > { %3793 = vmatpush3.bf16.msra.mxu1 %v4269_v39 }
 0x3fa   : > { %3794 = vmatprep.subr.bf16.mxu1 %v3940_v4 }
 0x454   : > { %v951_v40 = vpop.f32.mrb[4].mxu1 }
 0x455   : > { %v952_v41 = vadd.f32 1e-12, %v951_v40  ;;  %v3509_v42 = vpop.f32.mrb[5].mxu1 }
 0x457   : > { %3876 = vrsqrt.f32 %v952_v41 }
 0x461   : > { %v3877_v43 = vpop.eup %3876 }
 0x462   : > { %v956_v45 = vmul.f32 %v3877_v43, %v4241_v27 }
 0x464   : > { %v964_v46 = vmul.f32 %v3251_v44, %v956_v45  ;;  %v4354_v45 = vpack.c.bf16 %v4241_v27, %v4241_v27 }
 0x466   : > { %3526 = vmatmul.mubr.msk.f32.vlgmr.msra.gmra.mrb[8].mxu1 %vm796_vm2, %v964_v46  ;;  %v1056_v60 = vmul.f32 %v964_v46, %v4301_v56 }
 0x467   : > { %3532 = vmatprep.mubr.msk.f32.mxu1 %vm3939_vm3, %v3938_v1  ;;  %3796 = vmatpush3.bf16.msra.mxu1 %v4289_v53 }
 0x468   : > { %3535 = vmatprep.subr.bf16.mxu1 %v3938_v1 }
 0x4c7   : > { %v1036_v47 = vpop.f32.mrb[6].mxu1 }
 0x4c8   : > { %v1037_v48 = vadd.f32 1e-12, %v1036_v47  ;;  %v3516_v49 = vpop.f32.mrb[7].mxu1 }
 0x4ca   : > { %3878 = vrsqrt.f32 %v1037_v48 }
 0x4d4   : > { %v3879_v54 = vpop.eup %3878 }
 0x4d5   : > { %1042 = vrot.lane.b32.xlu1 %v3879_v54, %s3942_s27 }
 0x4d9   : > { %1052 = vrot.lane.b32.xlu1 %v3253_v55, %s3942_s27 }
 0x539   : > { %v1126_v59 = vpop.f32.mrb[8].mxu1 }
 0x53a   : > { %v1130_v61 = vmul.f32 %v1126_v59, %v4306_v58  ;;  %v3527_v62 = vpop.f32.mrb[9].mxu1 }
 0x53c   : > { %v1131_v63 = vadd.f32 %v1130_v61, %v1056_v60 }
 0x53e   : > { %v1220_v26 = vpack.c.bf16 %v1131_v63, %v1131_v63 }
 0x547   : > { %v1043_v0 = vpop.permute.xlu1 %1042 }
 0x548   : > { %v1045_v2 = vmul.f32 %v1043_v0, %v4241_v27 }
 0x54b   : > { %v1053_v5 = vpop.permute.xlu1 %1052 }
 0x54c   : > { %v1055_v6 = vmul.f32 %v1053_v5, %v1045_v2 }
 0x54e   : > { %1138 = vrot.lane.b32.xlu1 %v1055_v6, %s3941_s1 }
 0x552   : > { %1133 = vrot.lane.b32.xlu1 %v781_v7, %s3942_s27 }
 0x5c0   : > { %v1139_v12 = vpop.permute.xlu1 %1138 }
 0x5c1   : > { %3533 = vmatmul.mubr.msk.f32.vlgmr.msra.gmra.mrb[10].mxu1 %vm967_vm4, %v1139_v12  ;;  %v4385_v12 = vmul.f32 0.00390625, %v4337_v33 }
 0x5c2   : > { %3537 = vmatprep.mubr.msk.bf16.mxu1 %vm3939_vm3, %v3938_v1 }
 0x5c4   : > { %v4326_v17 = vpop.permute.xlu1 %1133 }
 0x5c5   : > { %v1136_v18 = vmul.f32 %v4326_v17, %v1055_v6 }
 0x694   : > { %v1208_v14 = vpop.f32.mrb[10].mxu1 }
 0x695   : > { %v1212_v15 = vmul.f32 %v1208_v14, %v4322_v13  ;;  %v3534_v16 = vpop.f32.mrb[11].mxu1 }
 0x697   : > { %1214 = vrot.lane.b32.xlu0 %v1212_v15, %s3942_s27 }
 0x709   : > { %v1215_v19 = vpop.permute.xlu0 %1214 }
 0x70a   : > { %v1217_v21 = vadd.f32 %v1215_v19, %v1136_v18 }
 0x70c   : > { %v1218_v22 = vpack.c.bf16 %v1217_v21, %v1217_v21 }
 0x70e   : > { %1223 = vrot.lane.b32.xlu1 %v1218_v22, %s3941_s1 }
 0x780   : > { %v1224_v23 = vpop.permute.xlu1 %1223 }
 0x781   : > { %v1230_v25 = vsel %vm1225_vm5, %v1224_v23, 0  ;;  %v4392_v23 = vmul.f32 0.0, %v4337_v33 }
 0x782   : > { %3536 = vmatpush3.bf16.xpose.msra.mxu1 %v1230_v25 }
 0x783   : > { %3541 = vmatprep.subr.bf16.mxu1 %v3938_v1 }
 0x789   : > { %3538 = vmatmul.mubr.msk.bf16.vlgmr.msra.gmra.mrb[12].mxu1 %vm1225_vm5, %v1220_v26 }
 0x78a   : > { %3543 = vmatprep.mubr.msk.bf16.mxu1 %vm3939_vm3, %v3938_v1 }
 0x85c   : > { %v1266_v36 = vpop.f32.mrb[12].mxu1 }
 0x85d   : > { %v1267_v38 = vadd.f32 %v1266_v36, %v4340_v34  ;;  %v3539_v40 = vpop.f32.mrb[13].mxu1 }
 0x85e   : > { %v1269_v41 = vpop.f32.mrb[14].mxu1 }
 0x85f   : > { %v3540_v42 = vpop.f32.mrb[15].mxu1  ;;  %v1272_v43 = vsel %vm4344_vm6, %v1267_v38, -1e+30 }
 0x860   : > { %v1273_v44 = vsel %vm1225_vm5, %v1272_v43, -inf }
 0x861   : > { %1274 = vmax.xlane.f32.xlu1 %v1273_v44 }
 0x872   : > { %1286 = vrot.lane.b32.xlu1 %v4354_v45, %s4783_s0 }
 0x876   : > { %1441 = vrot.lane.b32.xlu1 %v1218_v22, %s3944_s4 }
 0x87a   : > { %1439 = vrot.lane.b32.xlu1 %v1220_v26, %s4782_s30  ;;  %s4802_s30 = smov 8  }
 0x87e   : > { %1550 = vrot.lane.b32.xlu1 %v1220_v26, %s3946_s5 }
 0x8ee   : > { %v1275_v51 = vpop.xlane.xlu1 %1274 }
 0x8ef   : > { %v1276_v46 = vsub.f32 %v1272_v43, %v1275_v51 }
 0x8f1   : > { %v1277_v47 = vmul.f32 1.442695, %v1276_v46 }
 0x8f2   : > { %v1287_v48 = vpop.permute.xlu1 %1286 }
 0x8f3   : > { %3880 = vpow2.f32 %v1277_v47  ;;  %v1293_v27 = vsel %vm1291_vm7, %v1287_v48, 0 }
 0x8f4   : > { %3542 = vmatpush3.bf16.msra.mxu1 %v1293_v27  ;;  %3554 = vmatpush3.bf16.msra.mxu0 %v1293_v27 }
 0x8f5   : > { %3547 = vmatprep.subr.bf16.mxu1 %v3938_v1  ;;  %3565 = vmatprep.subr.bf16.mxu0 %v3938_v1 }
 0x8f6   : > { %v1442_v60 = vpop.permute.xlu1 %1441 }
 0x8f7   : > { %v1447_v62 = vsel %vm1225_vm5, %v1442_v60, 0 }
 0x8fa   : > { %v1440_v63 = vpop.permute.xlu1 %1439 }
 0x8fd   : > { %v3881_v49 = vpop.eup %3880 }
 0x8fe   : > { %v1279_v50 = vsel %vm1225_vm5, %v3881_v49, 0.0  ;;  %v1551_v0 = vpop.permute.xlu1 %1550 }
 0x8ff   : > { %1280 = vadd.xlane.f32.xlu0 %v1279_v50 }
 0x915   : > { %1337 = vrot.lane.b32.xlu0 %v1220_v26, %s3947_s22 }
 0x98c   : > { %v1281_v52 = vpop.xlane.xlu0 %1280 }
 0x98d   : > { %3882 = vrcp.f32 %v1281_v52 }
 0x990   : > { %v1338_v61 = vpop.permute.xlu0 %1337 }
 0x997   : > { %v3883_v54 = vpop.eup %3882 }
 0x998   : > { %v1283_v55 = vmul.f32 %v3883_v54, %v3881_v49 }
 0x99a   : > { %v1284_v59 = vpack.c.bf16 %v1283_v55, %v1283_v55 }
 0x99c   : > { %3544 = vmatmul.mubr.msk.bf16.vlgmr.msra.gmra.mrb[16].mxu1 %vm1225_vm5, %v1284_v59 }
 0x99d   : > { %3548 = vmatpush3.bf16.xpose.msra.mxu1 %v1230_v25  ;;  %3549 = vmatprep.mubr.msk.bf16.mxu1 %vm3939_vm3, %v3938_v1 }
 0x99e   : > { %3559 = vmatprep.subr.bf16.mxu1 %v3938_v1 }
 0x9a4   : > { %3550 = vmatmul.mubr.msk.bf16.vlgmr.msra.gmra.mrb[20].mxu1 %vm1225_vm5, %v1338_v61 }
 0x9a5   : > { %3560 = vmatpush3.bf16.xpose.msra.mxu1 %v1447_v62  ;;  %3561 = vmatprep.mubr.msk.bf16.mxu1 %vm3939_vm3, %v3938_v1 }
 0x9a6   : > { %3571 = vmatprep.subr.bf16.mxu1 %v3938_v1 }
 0x9ac   : > { %3562 = vmatmul.mubr.msk.bf16.vlgmr.msra.gmra.mrb[24].mxu1 %vm1225_vm5, %v1440_v63 }
 0x9ad   : > { %3572 = vmatpush3.bf16.xpose.msra.mxu1 %v1447_v62  ;;  %3573 = vmatprep.mubr.msk.bf16.mxu1 %vm3939_vm3, %v3938_v1 }
 0x9ae   : > { %3583 = vmatprep.subr.bf16.mxu1 %v3938_v1 }
 0x9b4   : > { %3574 = vmatmul.mubr.msk.bf16.vlgmr.msra.gmra.mrb[28].mxu1 %vm1225_vm5, %v1551_v0 }
 0x9b5   : > { %3587 = vmatprep.mubr.msk.bf16.mxu1 %vm3939_vm3, %v3938_v1 }
 0xa6f   : > { %v4382_v2 = vpop.f32.mrb[16].mxu1 }
 0xa70   : > { %v3545_v5 = vpop.f32.mrb[17].mxu1 }
 0xa71   : > { %v1332_v6 = vpop.f32.mrb[18].mxu1 }
 0xa72   : > { %v3546_v7 = vpop.f32.mrb[19].mxu1 }
 0xa77   : > { %v1376_v14 = vpop.f32.mrb[20].mxu1 }
 0xa78   : > { %v1377_v15 = vadd.f32 %v1376_v14, %v4385_v12  ;;  %v3551_v16 = vpop.f32.mrb[21].mxu1 }
 0xa79   : > { %v1379_v18 = vpop.f32.mrb[22].mxu1 }
 0xa7a   : > { %v3552_v19 = vpop.f32.mrb[23].mxu1  ;;  %v1382_v21 = vsel %vm4344_vm6, %v1377_v15, -1e+30 }
 0xa7b   : > { %v1383_v22 = vsel %vm1225_vm5, %v1382_v21, -inf }
 0xa7c   : > { %1384 = vmax.xlane.f32.xlu1 %v1383_v22 }
 0xa7f   : > { %v1483_v25 = vpop.f32.mrb[24].mxu1 }
 0xa80   : > { %v1484_v26 = vadd.f32 %v1483_v25, %v4392_v23  ;;  %v3563_v29 = vpop.f32.mrb[25].mxu1 }
 0xa81   : > { %v1486_v30 = vpop.f32.mrb[26].mxu1  ;;  %v3842_v29 = vld [vmem:[%s4768_s14] sm:$0xff]  }
 0xa82   : > { %v3564_v31 = vpop.f32.mrb[27].mxu1  ;;  %v1489_v32 = vsel %vm4344_vm6, %v1484_v26, -1e+30  ;;  %3584 = vmatpush3.bf16.msra.mxu1 %v3842_v29 }
 0xa83   : > { %v1490_v36 = vsel %vm1225_vm5, %v1489_v32, -inf  ;;  %3585 = vmatprep.subr.bf16.mxu1 %v3938_v1 }
 0xa84   : > { %1491 = vmax.xlane.f32.xlu0 %v1490_v36 }
 0xa87   : > { %v1589_v38 = vpop.f32.mrb[28].mxu1 }
 0xa88   : > { %v1590_v40 = vadd.f32 %v1589_v38, %v4392_v23  ;;  %v3575_v41 = vpop.f32.mrb[29].mxu1  ;;  %v3843_v38 = vld [vmem:[%s4768_s14 + $0x8] sm:$0xff]  }
 0xa89   : > { %v1592_v42 = vpop.f32.mrb[30].mxu1  ;;  %3586 = vmatpush3.bf16.msra.mxu1 %v3843_v38  ;;  %v3849_v38 = vld [vmem:[%s4771_s17 + $0x18] sm:$0xff]  }
 0xa8a   : > { %v3576_v43 = vpop.f32.mrb[31].mxu1  ;;  %v1595_v33 = vsel %vm4344_vm6, %v1590_v40, -1e+30  ;;  %3599 = vmatprep.subr.bf16.mxu1 %v3938_v1 }
 0xa8b   : > { %v1596_v44 = vsel %vm1225_vm5, %v1595_v33, -inf }
 0xa8c   : > { %1597 = vmax.xlane.f32.xlu0 %v1596_v44 }
 0xb09   : > { %v1385_v51 = vpop.xlane.xlu1 %1384 }
 0xb0a   : > { %v1386_v46 = vsub.f32 %v1382_v21, %v1385_v51 }
 0xb0c   : > { %v1387_v47 = vmul.f32 1.442695, %v1386_v46 }
 0xb0e   : > { %3884 = vpow2.f32 %v1387_v47 }
 0xb11   : > { %v1492_v48 = vpop.xlane.xlu0 %1491 }
 0xb12   : > { %v1493_v27 = vsub.f32 %v1489_v32, %v1492_v48 }
 0xb14   : > { %v1494_v49 = vmul.f32 1.442695, %v1493_v27 }
 0xb16   : > { %3886 = vpow2.f32 %v1494_v49 }
 0xb18   : > { %v3885_v50 = vpop.eup %3884 }
 0xb19   : > { %v1598_v52 = vpop.xlane.xlu0 %1597  ;;  %v1389_v54 = vsel %vm1225_vm5, %v3885_v50, 0.0 }
 0xb1a   : > { %v1599_v55 = vsub.f32 %v1595_v33, %v1598_v52  ;;  %1390 = vadd.xlane.f32.xlu1 %v1389_v54 }
 0xb1c   : > { %v1600_v59 = vmul.f32 1.442695, %v1599_v55 }
 0xb1e   : > { %3888 = vpow2.f32 %v1600_v59 }
 0xb20   : > { %v3887_v60 = vpop.eup %3886 }
 0xb21   : > { %v1496_v61 = vsel %vm1225_vm5, %v3887_v60, 0.0 }
 0xb22   : > { %1497 = vadd.xlane.f32.xlu0 %v1496_v61 }
 0xb28   : > { %v3889_v62 = vpop.eup %3888 }
 0xb29   : > { %v1602_v63 = vsel %vm1225_vm5, %v3889_v62, 0.0 }
 0xb2a   : > { %1603 = vadd.xlane.f32.xlu1 %v1602_v63 }
 0xb38   : > { %1502 = vrot.lane.b32.xlu0 %v4354_v45, %s4781_s23 }
 0xba7   : > { %v1391_v0 = vpop.xlane.xlu1 %1390 }
 0xba8   : > { %3890 = vrcp.f32 %v1391_v0 }
 0xbaf   : > { %v1498_v5 = vpop.xlane.xlu0 %1497 }
 0xbb0   : > { %3892 = vrcp.f32 %v1498_v5 }
 0xbb2   : > { %v3891_v6 = vpop.eup %3890 }
 0xbb3   : > { %v1393_v7 = vmul.f32 %v3891_v6, %v3885_v50  ;;  %v1503_v14 = vpop.permute.xlu0 %1502 }
 0xbb4   : > { %v1508_v16 = vsel %vm1291_vm7, %v1503_v14, 0  ;;  %v3845_v14 = vld [vmem:[%s4769_s15 + $0x8] sm:$0xff]  }
 0xbb5   : > { %v1394_v15 = vpack.c.bf16 %v1393_v7, %v1393_v7 }
 0xbb7   : > { %3556 = vmatmul.mubr.msk.bf16.vlgmr.msra.gmra.mrb[4].mxu0 %vm1225_vm5, %v1394_v15  ;;  %v1604_v18 = vpop.xlane.xlu1 %1603 }
 0xbb8   : > { %3894 = vrcp.f32 %v1604_v18  ;;  %3566 = vmatpush3.bf16.msra.mxu0 %v1508_v16  ;;  %3567 = vmatprep.mubr.msk.bf16.mxu0 %vm3939_vm3, %v3938_v1 }
 0xbb9   : > { %3577 = vmatprep.subr.bf16.mxu0 %v3938_v1 }
 0xbba   : > { %v3893_v45 = vpop.eup %3892 }
 0xbbb   : > { %v1500_v19 = vmul.f32 %v3893_v45, %v3887_v60  ;;  %v1743_v45 = vsub.s32 2, %v4197_v8 }
 0xbbd   : > { %v1501_v21 = vpack.c.bf16 %v1500_v19, %v1500_v19  ;;  %v1748_v19 = vsub.s32 3, %v4197_v8  ;;  %v3861_v8 = vld [vmem:[%s4771_s17 + $0x48] sm:$0xff]  }
 0xbbf   : > { %3568 = vmatmul.mubr.msk.bf16.vlgmr.msra.gmra.mrb[8].mxu0 %vm1225_vm5, %v1501_v21  ;;  %v1744_v21 = vrot.slane %v4203_v10, %v1743_v45 }
 0xbc0   : > { %3578 = vmatpush3.bf16.msra.mxu0 %v1508_v16  ;;  %3579 = vmatprep.mubr.msk.bf16.mxu0 %vm3939_vm3, %v3938_v1 }
 0xbc1   : > { %3591 = vmatprep.subr.bf16.mxu0 %v3938_v1 }
 0xbc2   : > { %v3895_v22 = vpop.eup %3894 }
 0xbc3   : > { %v1606_v25 = vmul.f32 %v3895_v22, %v3889_v62 }
 0xbc5   : > { %v1607_v26 = vpack.c.bf16 %v1606_v25, %v1606_v25 }
 0xbc7   : > { %3580 = vmatmul.mubr.msk.bf16.vlgmr.msra.gmra.mrb[12].mxu0 %vm1225_vm5, %v1607_v26  ;;  %v1749_v26 = vrot.slane %v4203_v10, %v1748_v19  ;;  %v3848_v10 = vld [vmem:[%s4771_s17 + $0x10] sm:$0xff]  }
 0xbc8   : > { %3595 = vmatprep.mubr.msk.bf16.mxu0 %vm3939_vm3, %v3938_v1 }
 0xc8a   : > { %v1432_v30 = vpop.f32.mrb[4].mxu0 }
 0xc8b   : > { %v3557_v31 = vpop.f32.mrb[5].mxu0  ;;  %1652 = vrot.lane.b32.xlu1 %v1432_v30, %s4780_s28 }
 0xc8c   : > { %v1435_v32 = vpop.f32.mrb[6].mxu0 }
 0xc8d   : > { %v3558_v36 = vpop.f32.mrb[7].mxu0  ;;  %v3846_v32 = vld [vmem:[%s4771_s17] sm:$0xff]  }
 0xc8e   : > { %v3847_v36 = vld [vmem:[%s4771_s17 + $0x8] sm:$0xff]  }
 0xc92   : > { %v1544_v40 = vpop.f32.mrb[8].mxu0 }
 0xc93   : > { %1656 = vrot.lane.b32.xlu1 %v1544_v40, %s4779_s24  ;;  %v3569_v41 = vpop.f32.mrb[9].mxu0  ;;  %v3850_v40 = vld [vmem:[%s4771_s17 + $0x20] sm:$0xff]   ;;  %s3355_s24 = sshll.u32 %s4807_s25, 4 }
 0xc94   : > { %v1547_v42 = vpop.f32.mrb[10].mxu0  ;;  %v3851_v41 = vld [vmem:[%s4771_s17 + $0x28] sm:$0xff]   ;;  %s653_s29 = scalar_lea.vmem %s4775_s21, %s3355_s24 }
 0xc95   : > { %v3570_v43 = vpop.f32.mrb[11].mxu0  ;;  %v3852_v42 = vld [vmem:[%s4771_s17 + $0x30] sm:$0xff]  }
 0xc96   : > { %v3853_v43 = vld [vmem:[%s4771_s17 + $0x38] sm:$0xff]  }
 0xc9a   : > { %v1645_v33 = vpop.f32.mrb[12].mxu0 }
 0xc9b   : > { %1660 = vrot.lane.b32.xlu0 %v1645_v33, %s4778_s26  ;;  %v3581_v44 = vpop.f32.mrb[13].mxu0  ;;  %v3267_v33 = vld [vmem:[%s4770_s16] ss:$0 sm:$0xff]  ;;  %s4803_s26 = smov 16  }
 0xc9c   : > { %v1648_v51 = vpop.f32.mrb[14].mxu0 }
 0xc9d   : > { %v3582_v46 = vpop.f32.mrb[15].mxu0 }
 0xcfd   : > { %v1653_v47 = vpop.permute.xlu1 %1652 }
 0xcfe   : > { %v1663_v27 = vsel %vm1225_vm5, %v4382_v2, %v1653_v47 }
 0xd05   : > { %v1657_v48 = vpop.permute.xlu1 %1656 }
 0xd06   : > { %v1664_v49 = vsel %vm967_vm4, %v1663_v27, %v1657_v48 }
 0xd0d   : > { %v1661_v50 = vpop.permute.xlu0 %1660 }
 0xd0e   : > { %v1666_v52 = vsel %vm1665_vm8, %v1664_v49, %v1661_v50 }
 0xd0f   : > { %v1667_v54 = vpack.c.bf16 %v1666_v52, %v1666_v52 }
 0xd11   : > { %3588 = vmatmul.mubr.msk.bf16.vlgmr.msra.gmra.mrb[32].mxu1 %vm796_vm2, %v1667_v54 }
 0xd12   : > { %3615 = vmatprep.mubr.msk.bf16.mxu1 %vm3939_vm3, %v3938_v1  ;;  %3600 = vmatpush3.bf16.msra.mxu1 %v3846_v32  ;;  %v4521_v32 = vld [vmem:[%s4764_s10 + $0x4] sm:$0xf] }
 0xd13   : > { %3601 = vmatprep.subr.bf16.mxu1 %v3938_v1 }
 0xd16   : > { %3602 = vmatpush3.bf16.msra.mxu1 %v3847_v36  ;;  %v1959_v36 = vrot.slane %v4521_v32, %v813_v9 }
 0xd17   : > { %3603 = vmatprep.subr.bf16.mxu1 %v3938_v1 }
 0xd1a   : > { %3604 = vmatpush3.bf16.msra.mxu1 %v3848_v10 }
 0xd1b   : > { %3605 = vmatprep.subr.bf16.mxu1 %v3938_v1 }
 0xd1e   : > { %3606 = vmatpush3.bf16.msra.mxu1 %v3849_v38  ;;  %v1964_v38 = vrot.slane %v4521_v32, %v818_v11 }
 0xd1f   : > { %3607 = vmatprep.subr.bf16.mxu1 %v3938_v1 }
 0xd22   : > { %3608 = vmatpush3.bf16.msra.mxu1 %v3850_v40 }
 0xd23   : > { %3609 = vmatprep.subr.bf16.mxu1 %v3938_v1 }
 0xd26   : > { %3610 = vmatpush3.bf16.msra.mxu1 %v3851_v41 }
 0xd27   : > { %3611 = vmatprep.subr.bf16.mxu1 %v3938_v1 }
 0xd2a   : > { %3612 = vmatpush3.bf16.msra.mxu1 %v3852_v42 }
 0xd2b   : > { %3613 = vmatprep.subr.bf16.mxu1 %v3938_v1 }
 0xd2e   : > { %3614 = vmatpush3.bf16.msra.mxu1 %v3853_v43 }
 0xd2f   : > { %3663 = vmatprep.subr.bf16.mxu1 %v3938_v1 }
 0xde4   : > { %v1721_v55 = vpop.f32.mrb[32].mxu1 }
 0xde5   : > { %v4438_v59 = vadd.f32 %v4177_v57, %v1721_v55  ;;  %v3589_v60 = vpop.f32.mrb[33].mxu1  ;;  %v3844_v57 = vld [vmem:[%s4769_s15] sm:$0xff]  }
 0xde6   : > { %v1724_v61 = vpop.f32.mrb[34].mxu1  ;;  %3592 = vmatpush3.bf16.msra.mxu0 %v3844_v57 }
 0xde7   : > { %v3590_v62 = vpop.f32.mrb[35].mxu1  ;;  %v1728_v2 = vsel %vm796_vm2, %v4438_v59, 0.0  ;;  %3593 = vmatprep.subr.bf16.mxu0 %v3938_v1 }
 0xde8   : > { %1729 = vadd.xlane.f32.xlu1 %v1728_v2 }
 0xdea   : > { %3594 = vmatpush3.bf16.msra.mxu0 %v3845_v14 }
 0xdeb   : > { %3619 = vmatprep.subr.bf16.mxu0 %v3938_v1 }
 0xe75   : > { %v1730_v63 = vpop.xlane.xlu1 %1729 }
 0xe76   : > { %v1731_v0 = vmul.f32 0.03125, %v1730_v63 }
 0xe78   : > { %v1732_v5 = vsub.f32 %v4438_v59, %v1731_v0  ;;  %v3279_v0 = vld [vmem:[%s4772_s18] ss:$0 sm:$0xff] }
 0xe7a   : > { %v1733_v6 = vmul.f32 %v1732_v5, %v1732_v5 }
 0xe7c   : > { %v1734_v7 = vsel %vm796_vm2, %v1733_v6, 0.0 }
 0xe7d   : > { %1735 = vadd.xlane.f32.xlu0 %v1734_v7 }
 0xf0a   : > { %v1736_v15 = vpop.xlane.xlu0 %1735 }
 0xf0b   : > { %v1737_v16 = vmul.f32 0.03125, %v1736_v15 }
 0xf0d   : > { %v1738_v18 = vadd.f32 1e-05, %v1737_v16 }
 0xf0f   : > { %3896 = vrsqrt.f32 %v1738_v18 }
 0xf19   : > { %v3897_v22 = vpop.eup %3896 }
 0xf1a   : > { %v1740_v25 = vmul.f32 %v3897_v22, %v1732_v5 }
 0xf1c   : > { %v1745_v29 = vmul.f32 %v1744_v21, %v1740_v25 }
 0xf1e   : > { %v1750_v30 = vadd.f32 %v1749_v26, %v1745_v29  ;;  %v3855_v26 = vld [vmem:[%s4765_s11 + $0x18] sm:$0xff]  }
 0xf20   : > { %v1751_v31 = vpack.c.bf16 %v1750_v30, %v1750_v30 }
 0xf22   : > { %3596 = vmatmul.mubr.msk.bf16.vlgmr.msra.gmra.mrb[16].mxu0 %vm796_vm2, %v1751_v31 }
 0xf23   : > { %3623 = vmatprep.mubr.msk.bf16.mxu0 %vm3939_vm3, %v3938_v1 }
 0xff5   : > { %v1812_v44 = vpop.f32.mrb[16].mxu0 }
 0xff6   : > { %v1813_v51 = vadd.f32 %v3267_v33, %v1812_v44  ;;  %v3597_v46 = vpop.f32.mrb[17].mxu0 }
 0xff7   : > { %v1815_v47 = vpop.f32.mrb[18].mxu0 }
 0xff8   : > { %v1818_v48 = vmul.f32 %v1813_v51, %v1813_v51  ;;  %v3598_v27 = vpop.f32.mrb[19].mxu0 }
 0xffa   : > { %v1819_v49 = vmul.f32 %v1818_v48, %v1813_v51  ;;  %v3290_v48 = vld [vmem:[%s4766_s12 + $0x1] ss:$0 sm:$0xff] }
 0xffc   : > { %v1820_v50 = vmul.f32 0.044715, %v1819_v49 }
 0xffe   : > { %v1821_v52 = vadd.f32 %v1820_v50, %v1813_v51 }
0x1000   : > { %v1822_v54 = vmul.f32 0.7978846, %v1821_v52  ;;  %v3293_v52 = vld [vmem:[%s4767_s13 + $0x1] ss:$0 sm:$0xff] }
0x1002   : > { %3898 = vtanh.f32 %v1822_v54 }
0x100c   : > { %v3899_v55 = vpop.eup %3898 }
0x100d   : > { %v1824_v60 = vadd.f32 1.0, %v3899_v55 }
0x100f   : > { %v1825_v61 = vmul.f32 0.5, %v1824_v60 }
0x1011   : > { %v1826_v62 = vmul.f32 %v1825_v61, %v1813_v51 }
0x1013   : > { %v1827_v2 = vpack.c.bf16 %v1826_v62, %v1826_v62 }
0x1015   : > { %3616 = vmatmul.mubr.bf16.vlgmr.msra.gmra.mrb[36].mxu1 %v1827_v2 }
0x1016   : > { %3665 = vmatprep.mubr.msk.bf16.mxu1 %vm3939_vm3, %v3938_v1 }
0x10e8   : > { %v1926_v63 = vpop.f32.mrb[36].mxu1 }
0x10e9   : > { %v1932_v5 = vadd.f32 %v1926_v63, %v4438_v59  ;;  %v3617_v6 = vpop.f32.mrb[37].mxu1  ;;  %v3854_v59 = vld [vmem:[%s4765_s11 + $0x10] sm:$0xff]  }
0x10ea   : > { %v1929_v7 = vpop.f32.mrb[38].mxu1  ;;  %3620 = vmatpush3.bf16.msra.mxu0 %v3854_v59 }
0x10eb   : > { %v4504_v57 = vadd.f32 %v3279_v0, %v1932_v5  ;;  %v3618_v14 = vpop.f32.mrb[39].mxu1  ;;  %3621 = vmatprep.subr.bf16.mxu0 %v3938_v1 }
0x10ed   : > { %v1943_v15 = vsel %vm796_vm2, %v4504_v57, 0.0 }
0x10ee   : > { %1944 = vadd.xlane.f32.xlu0 %v1943_v15  ;;  %3622 = vmatpush3.bf16.msra.mxu0 %v3855_v26 }
0x10ef   : > { %3797 = vmatprep.subr.bf16.mxu0 %v3940_v4 }
0x117b   : > { %v1945_v16 = vpop.xlane.xlu0 %1944 }
0x117c   : > { %v1946_v18 = vmul.f32 0.03125, %v1945_v16 }
0x117e   : > { %v1947_v21 = vsub.f32 %v4504_v57, %v1946_v18 }
0x1180   : > { %v1948_v22 = vmul.f32 %v1947_v21, %v1947_v21 }
0x1182   : > { %v1949_v25 = vsel %vm796_vm2, %v1948_v22, 0.0 }
0x1183   : > { %1950 = vadd.xlane.f32.xlu1 %v1949_v25 }
0x1210   : > { %v1951_v29 = vpop.xlane.xlu1 %1950 }
0x1211   : > { %v1952_v30 = vmul.f32 0.03125, %v1951_v29 }
0x1213   : > { %v1953_v31 = vadd.f32 1e-05, %v1952_v30 }
0x1215   : > { %3900 = vrsqrt.f32 %v1953_v31 }
0x121f   : > { %v3901_v10 = vpop.eup %3900 }
0x1220   : > { %v1955_v40 = vmul.f32 %v3901_v10, %v1947_v21 }
0x1222   : > { %v1960_v41 = vmul.f32 %v1959_v36, %v1955_v40 }
0x1224   : > { %v1965_v42 = vadd.f32 %v1964_v38, %v1960_v41 }
0x1226   : > { %v1966_v43 = vpack.c.bf16 %v1965_v42, %v1965_v42 }
0x1228   : > { %3624 = vmatmul.mubr.msk.bf16.vlgmr.msra.gmra.mrb[20].mxu0 %vm796_vm2, %v1966_v43 }
0x1229   : > { %3799 = vmatpush3.bf16.msra.mxu0 %v4218_v20  ;;  %3635 = vmatprep.mubr.msk.f32.mxu0 %vm3939_vm3, %v3938_v1 }
0x122a   : > { %3800 = vmatprep.subr.bf16.mxu0 %v3940_v4 }
0x122d   : > { %3802 = vmatpush3.bf16.msra.mxu0 %v4231_v24 }
0x122e   : > { %3803 = vmatprep.subr.bf16.mxu0 %v3940_v4 }
0x12fb   : > { %v4536_v9 = vpop.f32.mrb[20].mxu0 }
0x12fc   : > { %v3625_v11 = vpop.f32.mrb[21].mxu0  ;;  %v2027_v33 = vmul.f32 %v4536_v9, %v4536_v9  ;;  %v4593_v40 = vpack.c.bf16 %v4536_v9, %v4536_v9 }
0x12fd   : > { %v2024_v44 = vpop.f32.mrb[22].mxu0 }
0x12fe   : > { %2112 = vrot.lane.b32.xlu0 %v2027_v33, %s3941_s1  ;;  %v3626_v51 = vpop.f32.mrb[23].mxu0  ;;  %3636 = vmatmul.mubr.msk.f32.vlgmr.msra.gmra.mrb[2].mxu0 %vm796_vm2, %v2027_v33 }
0x12ff   : > { %3805 = vmatpush3.bf16.msra.mxu0 %v4243_v28  ;;  %3642 = vmatprep.mubr.msk.f32.mxu0 %vm3939_vm3, %v3938_v1 }
0x1300   : > { %3806 = vmatprep.subr.bf16.mxu0 %v3940_v4 }
0x1370   : > { %v2113_v20 = vpop.permute.xlu0 %2112 }
0x1371   : > { %3643 = vmatmul.mubr.msk.f32.vlgmr.msra.gmra.mrb[24].mxu0 %vm967_vm4, %v2113_v20 }
0x1372   : > { %3808 = vmatpush3.bf16.msra.mxu0 %v4259_v35  ;;  %3653 = vmatprep.mubr.msk.f32.mxu0 %vm3939_vm3, %v3938_v1 }
0x1373   : > { %3809 = vmatprep.subr.bf16.mxu0 %v3940_v4 }
0x1376   : > { %3811 = vmatpush3.bf16.msra.mxu0 %v4269_v39 }
0x1377   : > { %3812 = vmatprep.subr.bf16.mxu0 %v3940_v4 }
0x13d1   : > { %v2097_v24 = vpop.f32.mrb[2].mxu0 }
0x13d2   : > { %v2098_v28 = vadd.f32 1e-12, %v2097_v24  ;;  %v3637_v46 = vpop.f32.mrb[3].mxu0 }
0x13d4   : > { %3902 = vrsqrt.f32 %v2098_v28 }
0x13de   : > { %v3903_v47 = vpop.eup %3902 }
0x13df   : > { %v2102_v35 = vmul.f32 %v3903_v47, %v4536_v9 }
0x13e1   : > { %v2111_v27 = vmul.f32 %v3290_v48, %v2102_v35 }
0x13e3   : > { %3654 = vmatmul.mubr.msk.f32.vlgmr.msra.gmra.mrb[26].mxu0 %vm796_vm2, %v2111_v27 }
0x13e4   : > { %3814 = vmatpush3.bf16.msra.mxu0 %v4289_v53  ;;  %3660 = vmatprep.mubr.msk.f32.mxu0 %vm3939_vm3, %v3938_v1  ;;  %v2203_v53 = vmul.f32 %v2111_v27, %v4301_v56 }
0x13e5   : > { %3669 = vmatprep.subr.bf16.mxu0 %v3938_v1 }
0x1444   : > { %v2182_v4 = vpop.f32.mrb[24].mxu0 }
0x1445   : > { %v2183_v39 = vadd.f32 1e-12, %v2182_v4  ;;  %v3644_v49 = vpop.f32.mrb[25].mxu0 }
0x1447   : > { %3904 = vrsqrt.f32 %v2183_v39 }
0x1451   : > { %v3905_v50 = vpop.eup %3904 }
0x1452   : > { %2188 = vrot.lane.b32.xlu1 %v3905_v50, %s3942_s27 }
0x1456   : > { %2199 = vrot.lane.b32.xlu1 %v3293_v52, %s3942_s27 }
0x14b6   : > { %v2273_v54 = vpop.f32.mrb[26].mxu0 }
0x14b7   : > { %v2277_v55 = vmul.f32 %v2273_v54, %v4306_v58  ;;  %v3655_v60 = vpop.f32.mrb[27].mxu0 }
0x14b9   : > { %v2278_v61 = vadd.f32 %v2277_v55, %v2203_v53 }
0x14bb   : > { %v2363_v22 = vpack.c.bf16 %v2278_v61, %v2278_v61 }
0x14c4   : > { %v2189_v62 = vpop.permute.xlu1 %2188 }
0x14c5   : > { %v2191_v2 = vmul.f32 %v2189_v62, %v4536_v9 }
0x14c8   : > { %v2200_v63 = vpop.permute.xlu1 %2199 }
0x14c9   : > { %v2202_v0 = vmul.f32 %v2200_v63, %v2191_v2 }
0x14cb   : > { %2281 = vrot.lane.b32.xlu0 %v2202_v0, %s3941_s1  ;;  %v2279_v58 = vmul.f32 %v2202_v0, %v4326_v17 }
0x153d   : > { %v2282_v5 = vpop.permute.xlu0 %2281 }
0x153e   : > { %3661 = vmatmul.mubr.msk.f32.vlgmr.msra.gmra.mrb[28].mxu0 %vm967_vm4, %v2282_v5 }
0x153f   : > { %3671 = vmatprep.mubr.msk.bf16.mxu0 %vm3939_vm3, %v3938_v1 }
0x1611   : > { %v2351_v6 = vpop.f32.mrb[28].mxu0 }
0x1612   : > { %v2355_v56 = vmul.f32 %v2351_v6, %v4322_v13  ;;  %v3662_v7 = vpop.f32.mrb[29].mxu0 }
0x1614   : > { %2357 = vrot.lane.b32.xlu1 %v2355_v56, %s3942_s27  ;;  %s4800_s27 = smov 112  }
0x1686   : > { %v2358_v14 = vpop.permute.xlu1 %2357 }
0x1687   : > { %v2360_v15 = vadd.f32 %v2358_v14, %v2279_v58 }
0x1689   : > { %v2361_v16 = vpack.c.bf16 %v2360_v15, %v2360_v15 }
0x168b   : > { %2365 = vrot.lane.b32.xlu0 %v2361_v16, %s3941_s1  ;;  %s4799_s1 = smov 80  }
0x16fd   : > { %v2366_v18 = vpop.permute.xlu0 %2365 }
0x16fe   : > { %v2371_v21 = vsel %vm1225_vm5, %v2366_v18, 0 }
0x16ff   : > { %3664 = vmatpush3.bf16.xpose.msra.mxu1 %v2371_v21 }
0x1700   : > { %3681 = vmatprep.subr.bf16.mxu1 %v3938_v1 }
0x1706   : > { %3666 = vmatmul.mubr.msk.bf16.vlgmr.msra.gmra.mrb[40].mxu1 %vm1225_vm5, %v2363_v22 }
0x1707   : > { %3683 = vmatprep.mubr.msk.bf16.mxu1 %vm3939_vm3, %v3938_v1 }
0x17d9   : > { %v2407_v13 = vpop.f32.mrb[40].mxu1 }
0x17da   : > { %v2408_v17 = vadd.f32 %v2407_v13, %v4340_v34  ;;  %v3667_v25 = vpop.f32.mrb[41].mxu1 }
0x17db   : > { %v2410_v59 = vpop.f32.mrb[42].mxu1 }
0x17dc   : > { %v3668_v26 = vpop.f32.mrb[43].mxu1  ;;  %v2413_v29 = vsel %vm4344_vm6, %v2408_v17, -1e+30 }
0x17dd   : > { %v2414_v30 = vsel %vm1225_vm5, %v2413_v29, -inf }
0x17de   : > { %2415 = vmax.xlane.f32.xlu1 %v2414_v30 }
0x17ef   : > { %2476 = vrot.lane.b32.xlu1 %v2363_v22, %s3947_s22 }
0x17f3   : > { %2579 = vrot.lane.b32.xlu1 %v2361_v16, %s3944_s4  ;;  %s4801_s4 = smov 72  }
0x17f7   : > { %2688 = vrot.lane.b32.xlu1 %v2363_v22, %s3946_s5 }
0x186b   : > { %v2416_v31 = vpop.xlane.xlu1 %2415 }
0x186c   : > { %v2417_v36 = vsub.f32 %v2413_v29, %v2416_v31 }
0x186e   : > { %v2418_v10 = vmul.f32 1.442695, %v2417_v36 }
0x186f   : > { %v2477_v44 = vpop.permute.xlu1 %2476 }
0x1870   : > { %3906 = vpow2.f32 %v2418_v10 }
0x1873   : > { %v2580_v51 = vpop.permute.xlu1 %2579 }
0x1874   : > { %v2585_v20 = vsel %vm1225_vm5, %v2580_v51, 0 }
0x1877   : > { %v2689_v28 = vpop.permute.xlu1 %2688 }
0x187a   : > { %v3907_v34 = vpop.eup %3906 }
0x187b   : > { %v2420_v38 = vsel %vm1225_vm5, %v3907_v34, 0.0 }
0x187c   : > { %2421 = vadd.xlane.f32.xlu0 %v2420_v38 }
0x1892   : > { %2427 = vrot.lane.b32.xlu0 %v4593_v40, %s4799_s1 }
0x1896   : > { %2577 = vrot.lane.b32.xlu0 %v2363_v22, %s4800_s27 }
0x1909   : > { %v2422_v41 = vpop.xlane.xlu0 %2421 }
0x190a   : > { %3908 = vrcp.f32 %v2422_v41 }
0x190d   : > { %v2428_v42 = vpop.permute.xlu0 %2427 }
0x190e   : > { %v2433_v43 = vsel %vm1291_vm7, %v2428_v42, 0 }
0x190f   : > { %3670 = vmatpush3.bf16.msra.mxu0 %v2433_v43  ;;  %3682 = vmatpush3.bf16.msra.mxu1 %v2433_v43 }
0x1910   : > { %3675 = vmatprep.subr.bf16.mxu0 %v3938_v1  ;;  %3693 = vmatprep.subr.bf16.mxu1 %v3938_v1 }
0x1911   : > { %v2578_v24 = vpop.permute.xlu0 %2577 }
0x1914   : > { %v3909_v11 = vpop.eup %3908 }
0x1915   : > { %v2424_v33 = vmul.f32 %v3909_v11, %v3907_v34 }
0x1917   : > { %v2425_v9 = vpack.c.bf16 %v2424_v33, %v2424_v33 }
0x1919   : > { %3672 = vmatmul.mubr.msk.bf16.vlgmr.msra.gmra.mrb[32].mxu0 %vm1225_vm5, %v2425_v9 }
0x191a   : > { %3676 = vmatpush3.bf16.xpose.msra.mxu0 %v2371_v21  ;;  %3677 = vmatprep.mubr.msk.bf16.mxu0 %vm3939_vm3, %v3938_v1 }
0x191b   : > { %3687 = vmatprep.subr.bf16.mxu0 %v3938_v1 }
0x1921   : > { %3678 = vmatmul.mubr.msk.bf16.vlgmr.msra.gmra.mrb[36].mxu0 %vm1225_vm5, %v2477_v44 }
0x1922   : > { %3688 = vmatpush3.bf16.xpose.msra.mxu0 %v2585_v20  ;;  %3689 = vmatprep.mubr.msk.bf16.mxu0 %vm3939_vm3, %v3938_v1 }
0x1923   : > { %3699 = vmatprep.subr.bf16.mxu0 %v3938_v1 }
0x1929   : > { %3690 = vmatmul.mubr.msk.bf16.vlgmr.msra.gmra.mrb[40].mxu0 %vm1225_vm5, %v2578_v24 }
0x192a   : > { %3700 = vmatpush3.bf16.xpose.msra.mxu0 %v2585_v20  ;;  %3701 = vmatprep.mubr.msk.bf16.mxu0 %vm3939_vm3, %v3938_v1  ;;  %v3856_v20 = vld [vmem:[%s4768_s14 + $0x10] sm:$0xff]  }
0x192b   : > { %3711 = vmatprep.subr.bf16.mxu0 %v3938_v1 }
0x1931   : > { %3702 = vmatmul.mubr.msk.bf16.vlgmr.msra.gmra.mrb[44].mxu0 %vm1225_vm5, %v2689_v28 }
0x1932   : > { %3715 = vmatprep.mubr.msk.bf16.mxu0 %vm3939_vm3, %v3938_v1  ;;  %3712 = vmatpush3.bf16.msra.mxu0 %v3856_v20 }
0x1933   : > { %3713 = vmatprep.subr.bf16.mxu0 %v3938_v1 }
0x19ec   : > { %v4617_v46 = vpop.f32.mrb[32].mxu0 }
0x19ed   : > { %v3673_v47 = vpop.f32.mrb[33].mxu0 }
0x19ee   : > { %v2472_v48 = vpop.f32.mrb[34].mxu0 }
0x19ef   : > { %v3674_v35 = vpop.f32.mrb[35].mxu0 }
0x19f0   : > { %v3857_v35 = vld [vmem:[%s4768_s14 + $0x18] sm:$0xff]  }
0x19f1   : > { %3714 = vmatpush3.bf16.msra.mxu0 %v3857_v35  ;;  %v3345_v35 = vld [vmem:[%s4772_s18 + $0x1] ss:$0 sm:$0xff] }
0x19f2   : > { %3727 = vmatprep.subr.bf16.mxu0 %v3938_v1 }
0x19f4   : > { %v2515_v27 = vpop.f32.mrb[36].mxu0 }
0x19f5   : > { %v2516_v4 = vadd.f32 %v2515_v27, %v4385_v12  ;;  %v3679_v39 = vpop.f32.mrb[37].mxu0 }
0x19f6   : > { %v2518_v49 = vpop.f32.mrb[38].mxu0 }
0x19f7   : > { %v3680_v50 = vpop.f32.mrb[39].mxu0  ;;  %v2521_v52 = vsel %vm4344_vm6, %v2516_v4, -1e+30 }
0x19f8   : > { %v2522_v54 = vsel %vm1225_vm5, %v2521_v52, -inf }
0x19f9   : > { %2523 = vmax.xlane.f32.xlu0 %v2522_v54 }
0x19fc   : > { %v2621_v53 = vpop.f32.mrb[40].mxu0 }
0x19fd   : > { %v2622_v55 = vadd.f32 %v2621_v53, %v4392_v23  ;;  %v3691_v60 = vpop.f32.mrb[41].mxu0 }
0x19fe   : > { %v2624_v61 = vpop.f32.mrb[42].mxu0 }
0x19ff   : > { %v3692_v62 = vpop.f32.mrb[43].mxu0  ;;  %v2627_v2 = vsel %vm4344_vm6, %v2622_v55, -1e+30 }
0x1a00   : > { %v2628_v12 = vsel %vm1225_vm5, %v2627_v2, -inf }
0x1a01   : > { %2629 = vmax.xlane.f32.xlu1 %v2628_v12 }
0x1a04   : > { %v2727_v63 = vpop.f32.mrb[44].mxu0 }
0x1a05   : > { %v2728_v0 = vadd.f32 %v2727_v63, %v4392_v23  ;;  %v3703_v5 = vpop.f32.mrb[45].mxu0 }
0x1a06   : > { %v2730_v6 = vpop.f32.mrb[46].mxu0 }
0x1a07   : > { %v3704_v56 = vpop.f32.mrb[47].mxu0  ;;  %v2733_v7 = vsel %vm4344_vm6, %v2728_v0, -1e+30 }
0x1a08   : > { %v2734_v58 = vsel %vm1225_vm5, %v2733_v7, -inf }
0x1a09   : > { %2735 = vmax.xlane.f32.xlu0 %v2734_v58 }
0x1a86   : > { %v2524_v14 = vpop.xlane.xlu0 %2523 }
0x1a87   : > { %v2525_v15 = vsub.f32 %v2521_v52, %v2524_v14 }
0x1a89   : > { %v2526_v16 = vmul.f32 1.442695, %v2525_v15 }
0x1a8b   : > { %3910 = vpow2.f32 %v2526_v16 }
0x1a8e   : > { %v2630_v18 = vpop.xlane.xlu1 %2629 }
0x1a8f   : > { %v2631_v21 = vsub.f32 %v2627_v2, %v2630_v18 }
0x1a91   : > { %v2632_v22 = vmul.f32 1.442695, %v2631_v21  ;;  %v3859_v21 = vld [vmem:[%s4769_s15 + $0x18] sm:$0xff]  }
0x1a93   : > { %3912 = vpow2.f32 %v2632_v22 }
0x1a95   : > { %v3911_v13 = vpop.eup %3910 }
0x1a96   : > { %v2736_v17 = vpop.xlane.xlu0 %2735  ;;  %v2528_v23 = vsel %vm1225_vm5, %v3911_v13, 0.0 }
0x1a97   : > { %v2737_v25 = vsub.f32 %v2733_v7, %v2736_v17  ;;  %2529 = vadd.xlane.f32.xlu0 %v2528_v23  ;;  %v2882_v23 = vrot.slane %v4521_v32, %v1743_v45  ;;  %v3862_v45 = vld [vmem:[%s4771_s17 + $0x50] sm:$0xff]  }
0x1a99   : > { %v2738_v59 = vmul.f32 1.442695, %v2737_v25 }
0x1a9b   : > { %3914 = vpow2.f32 %v2738_v59 }
0x1a9d   : > { %v3913_v37 = vpop.eup %3912 }
0x1a9e   : > { %v2634_v26 = vsel %vm1225_vm5, %v3913_v37, 0.0 }
0x1a9f   : > { %2635 = vadd.xlane.f32.xlu1 %v2634_v26 }
0x1aa5   : > { %v3915_v29 = vpop.eup %3914 }
0x1aa6   : > { %v2740_v30 = vsel %vm1225_vm5, %v3915_v29, 0.0 }
0x1aa7   : > { %2741 = vadd.xlane.f32.xlu0 %v2740_v30 }
0x1ab0   : > { %2640 = vrot.lane.b32.xlu1 %v4593_v40, %s4801_s4 }
0x1b24   : > { %v2530_v31 = vpop.xlane.xlu0 %2529 }
0x1b25   : > { %3916 = vrcp.f32 %v2530_v31  ;;  %v3860_v31 = vld [vmem:[%s4771_s17 + $0x40] sm:$0xff]  }
0x1b2c   : > { %v2636_v36 = vpop.xlane.xlu1 %2635 }
0x1b2d   : > { %3918 = vrcp.f32 %v2636_v36  ;;  %v3866_v36 = vld [vmem:[%s4771_s17 + $0x70] sm:$0xff]  }
0x1b2f   : > { %v3917_v10 = vpop.eup %3916 }
0x1b30   : > { %v2532_v34 = vmul.f32 %v3917_v10, %v3911_v13  ;;  %v2641_v38 = vpop.permute.xlu1 %2640  ;;  %v3867_v10 = vld [vmem:[%s4771_s17 + $0x78] sm:$0xff]  }
0x1b31   : > { %v2646_v42 = vsel %vm1291_vm7, %v2641_v38, 0 }
0x1b32   : > { %v2533_v41 = vpack.c.bf16 %v2532_v34, %v2532_v34  ;;  %v3316_v34 = vld [vmem:[%s4770_s16 + $0x1] ss:$0 sm:$0xff] }
0x1b34   : > { %3684 = vmatmul.mubr.msk.bf16.vlgmr.msra.gmra.mrb[44].mxu1 %vm1225_vm5, %v2533_v41  ;;  %v2742_v43 = vpop.xlane.xlu0 %2741 }
0x1b35   : > { %3920 = vrcp.f32 %v2742_v43  ;;  %3694 = vmatpush3.bf16.msra.mxu1 %v2646_v42  ;;  %3695 = vmatprep.mubr.msk.bf16.mxu1 %vm3939_vm3, %v3938_v1 }
0x1b36   : > { %3705 = vmatprep.subr.bf16.mxu1 %v3938_v1 }
0x1b37   : > { %v3919_v40 = vpop.eup %3918 }
0x1b38   : > { %v2638_v11 = vmul.f32 %v3919_v40, %v3913_v37  ;;  %v2887_v37 = vrot.slane %v4521_v32, %v1748_v19  ;;  %v3864_v19 = vld [vmem:[%s4771_s17 + $0x60] sm:$0xff]   ;;  %v3865_v32 = vld [vmem:[%s4771_s17 + $0x68] sm:$0xff]  }
0x1b3a   : > { %v2639_v33 = vpack.c.bf16 %v2638_v11, %v2638_v11 }
0x1b3c   : > { %3696 = vmatmul.mubr.msk.bf16.vlgmr.msra.gmra.mrb[48].mxu1 %vm1225_vm5, %v2639_v33 }
0x1b3d   : > { %3706 = vmatpush3.bf16.msra.mxu1 %v2646_v42  ;;  %3707 = vmatprep.mubr.msk.bf16.mxu1 %vm3939_vm3, %v3938_v1 }
0x1b3e   : > { %3719 = vmatprep.subr.bf16.mxu1 %v3938_v1 }
0x1b3f   : > { %v3921_v9 = vpop.eup %3920 }
0x1b40   : > { %v2744_v44 = vmul.f32 %v3921_v9, %v3915_v29 }
0x1b42   : > { %v2745_v51 = vpack.c.bf16 %v2744_v44, %v2744_v44 }
0x1b44   : > { %3708 = vmatmul.mubr.msk.bf16.vlgmr.msra.gmra.mrb[52].mxu1 %vm1225_vm5, %v2745_v51 }
0x1b45   : > { %3723 = vmatprep.mubr.msk.bf16.mxu1 %vm3939_vm3, %v3938_v1 }
0x1c07   : > { %v2571_v24 = vpop.f32.mrb[44].mxu1 }
0x1c08   : > { %2790 = vrot.lane.b32.xlu0 %v2571_v24, %s4802_s30  ;;  %v3685_v28 = vpop.f32.mrb[45].mxu1 }
0x1c09   : > { %v2574_v47 = vpop.f32.mrb[46].mxu1 }
0x1c0a   : > { %v3686_v48 = vpop.f32.mrb[47].mxu1 }
0x1c0f   : > { %v2682_v27 = vpop.f32.mrb[48].mxu1 }
0x1c10   : > { %2794 = vrot.lane.b32.xlu1 %v2682_v27, %s4803_s26  ;;  %v3697_v4 = vpop.f32.mrb[49].mxu1 }
0x1c11   : > { %v2685_v39 = vpop.f32.mrb[50].mxu1 }
0x1c12   : > { %v3698_v49 = vpop.f32.mrb[51].mxu1 }
0x1c17   : > { %v2783_v50 = vpop.f32.mrb[52].mxu1 }
0x1c18   : > { %2798 = vrot.lane.b32.xlu1 %v2783_v50, %s4804_s2  ;;  %v3709_v52 = vpop.f32.mrb[53].mxu1 }
0x1c19   : > { %v2786_v54 = vpop.f32.mrb[54].mxu1 }
0x1c1a   : > { %v3710_v53 = vpop.f32.mrb[55].mxu1 }
0x1c7a   : > { %v2791_v55 = vpop.permute.xlu0 %2790 }
0x1c7b   : > { %v2801_v61 = vsel %vm1225_vm5, %v4617_v46, %v2791_v55 }
0x1c82   : > { %v2795_v60 = vpop.permute.xlu1 %2794 }
0x1c83   : > { %v2802_v62 = vsel %vm967_vm4, %v2801_v61, %v2795_v60 }
0x1c8a   : > { %v2799_v2 = vpop.permute.xlu1 %2798 }
0x1c8b   : > { %v2803_v12 = vsel %vm1665_vm8, %v2802_v62, %v2799_v2  ;;  %v3870_v62 = vld [vmem:[%s4774_s20 + $0x4] ss:$8 sps:$4 sm:$0xff]   ;;  %v3868_v2 = vld [vmem:[%s4774_s20] ss:$8 sps:$4 sm:$0xff]  }
0x1c8c   : > { %v2804_v63 = vpack.c.bf16 %v2803_v12, %v2803_v12  ;;  %v3871_v12 = vld [vmem:[%s4774_s20 + $0x10] ss:$8 sps:$4 sm:$0xff]  }
0x1c8e   : > { %3716 = vmatmul.mubr.msk.bf16.vlgmr.msra.gmra.mrb[48].mxu0 %vm796_vm2, %v2804_v63  ;;  %v3873_v63 = vld [vmem:[%s4774_s20 + $0x14] ss:$8 sps:$4 sm:$0xff]  }
0x1c8f   : > { %3743 = vmatprep.mubr.msk.bf16.mxu0 %vm3939_vm3, %v3938_v1  ;;  %3728 = vmatpush3.bf16.msra.mxu0 %v3860_v31 }
0x1c90   : > { %3729 = vmatprep.subr.bf16.mxu0 %v3938_v1 }
0x1c93   : > { %3730 = vmatpush3.bf16.msra.mxu0 %v3861_v8 }
0x1c94   : > { %3731 = vmatprep.subr.bf16.mxu0 %v3938_v1 }
0x1c97   : > { %3732 = vmatpush3.bf16.msra.mxu0 %v3862_v45 }
0x1c98   : > { %3733 = vmatprep.subr.bf16.mxu0 %v3938_v1 }
0x1d61   : > { %v2859_v0 = vpop.f32.mrb[48].mxu0 }
0x1d62   : > { %v4667_v5 = vadd.f32 %v2859_v0, %v4504_v57  ;;  %v3717_v6 = vpop.f32.mrb[49].mxu0  ;;  %v3858_v57 = vld [vmem:[%s4769_s15 + $0x10] sm:$0xff]  }
0x1d63   : > { %v2862_v56 = vpop.f32.mrb[50].mxu0  ;;  %3720 = vmatpush3.bf16.msra.mxu1 %v3858_v57 }
0x1d64   : > { %v3718_v7 = vpop.f32.mrb[51].mxu0  ;;  %v2866_v46 = vsel %vm796_vm2, %v4667_v5, 0.0  ;;  %3721 = vmatprep.subr.bf16.mxu1 %v3938_v1 }
0x1d65   : > { %2867 = vadd.xlane.f32.xlu0 %v2866_v46  ;;  %v3346_v7 = vld [vmem:[%s4773_s19] ss:$0 sm:$0xff] }
0x1d67   : > { %3722 = vmatpush3.bf16.msra.mxu1 %v3859_v21 }
0x1d68   : > { %3136 = vmatprep.subr.bf16.mxu1 %v3870_v62 }
0x1df2   : > { %v2868_v58 = vpop.xlane.xlu0 %2867 }
0x1df3   : > { %v2869_v14 = vmul.f32 0.03125, %v2868_v58  ;;  %v3347_v58 = vld [vmem:[%s4773_s19 + $0x1] ss:$0 sm:$0xff] }
0x1df5   : > { %v2870_v15 = vsub.f32 %v4667_v5, %v2869_v14 }
0x1df7   : > { %v2871_v16 = vmul.f32 %v2870_v15, %v2870_v15 }
0x1df9   : > { %v2872_v18 = vsel %vm796_vm2, %v2871_v16, 0.0 }
0x1dfa   : > { %2873 = vadd.xlane.f32.xlu1 %v2872_v18 }
0x1e87   : > { %v2874_v22 = vpop.xlane.xlu1 %2873 }
0x1e88   : > { %v2875_v13 = vmul.f32 0.03125, %v2874_v22 }
0x1e8a   : > { %v2876_v17 = vadd.f32 1e-05, %v2875_v13 }
0x1e8c   : > { %3922 = vrsqrt.f32 %v2876_v17 }
0x1e96   : > { %v3923_v25 = vpop.eup %3922 }
0x1e97   : > { %v2878_v59 = vmul.f32 %v3923_v25, %v2870_v15 }
0x1e99   : > { %v2883_v26 = vmul.f32 %v2882_v23, %v2878_v59 }
0x1e9b   : > { %v2888_v29 = vadd.f32 %v2887_v37, %v2883_v26 }
0x1e9d   : > { %v2889_v30 = vpack.c.bf16 %v2888_v29, %v2888_v29 }
0x1e9f   : > { %3724 = vmatmul.mubr.msk.bf16.vlgmr.msra.gmra.mrb[56].mxu1 %vm796_vm2, %v2889_v30 }
0x1ea0   : > { %3168 = vmatprep.mubr.bf16.mxu1 %v3936_v3  ;;  %v3863_v3 = vld [vmem:[%s4771_s17 + $0x58] sm:$0xff]   ;;  %3137 = vmatpush1.bf16.msra.mxu1 %v3868_v2 }
0x1ea1   : > { %3734 = vmatpush3.bf16.msra.mxu0 %v3863_v3  ;;  %3138 = vmatprep.subr.bf16.mxu1 %v3873_v63 }
0x1ea2   : > { %3735 = vmatprep.subr.bf16.mxu0 %v3938_v1 }
0x1ea4   : > { %3139 = vmatpush1.bf16.msra.mxu1 %v3871_v12 }
0x1ea5   : > { %3736 = vmatpush3.bf16.msra.mxu0 %v3864_v19 }
0x1ea6   : > { %3737 = vmatprep.subr.bf16.mxu0 %v3938_v1 }
0x1ea9   : > { %3738 = vmatpush3.bf16.msra.mxu0 %v3865_v32 }
0x1eaa   : > { %3739 = vmatprep.subr.bf16.mxu0 %v3938_v1 }
0x1ead   : > { %3740 = vmatpush3.bf16.msra.mxu0 %v3866_v36 }
0x1eae   : > { %3741 = vmatprep.subr.bf16.mxu0 %v3938_v1 }
0x1eb1   : > { %3742 = vmatpush3.bf16.msra.mxu0 %v3867_v10 }
0x1f72   : > { %v2952_v38 = vpop.f32.mrb[56].mxu1 }
0x1f73   : > { %v2953_v41 = vadd.f32 %v3316_v34, %v2952_v38  ;;  %v3725_v42 = vpop.f32.mrb[57].mxu1 }
0x1f74   : > { %v2955_v43 = vpop.f32.mrb[58].mxu1 }
0x1f75   : > { %v2958_v40 = vmul.f32 %v2953_v41, %v2953_v41  ;;  %v3726_v11 = vpop.f32.mrb[59].mxu1 }
0x1f77   : > { %v2959_v33 = vmul.f32 %v2958_v40, %v2953_v41 }
0x1f79   : > { %v2960_v9 = vmul.f32 0.044715, %v2959_v33 }
0x1f7b   : > { %v2961_v44 = vadd.f32 %v2960_v9, %v2953_v41 }
0x1f7d   : > { %v2962_v51 = vmul.f32 0.7978846, %v2961_v44 }
0x1f7f   : > { %3924 = vtanh.f32 %v2962_v51 }
0x1f89   : > { %v3925_v20 = vpop.eup %3924 }
0x1f8a   : > { %v2964_v24 = vadd.f32 1.0, %v3925_v20 }
0x1f8c   : > { %v2965_v28 = vmul.f32 0.5, %v2964_v24 }
0x1f8e   : > { %v2966_v1 = vmul.f32 %v2965_v28, %v2953_v41 }
0x1f90   : > { %v2967_v47 = vpack.c.bf16 %v2966_v1, %v2966_v1 }
0x1f92   : > { %3744 = vmatmul.mubr.bf16.vlgmr.msra.gmra.mrb[52].mxu0 %v2967_v47 }
0x2065   : > { %v3067_v48 = vpop.f32.mrb[52].mxu0 }
0x2066   : > { %v3073_v27 = vadd.f32 %v3067_v48, %v4667_v5  ;;  %v3745_v4 = vpop.f32.mrb[53].mxu0 }
0x2067   : > { %v3070_v39 = vpop.f32.mrb[54].mxu0 }
0x2068   : > { %v3746_v49 = vpop.f32.mrb[55].mxu0  ;;  %v3082_v50 = vadd.f32 %v3345_v35, %v3073_v27 }
0x206a   : > { %v3085_v52 = vsel %vm796_vm2, %v3082_v50, 0.0 }
0x206b   : > { %3086 = vadd.xlane.f32.xlu0 %v3085_v52 }
0x20f8   : > { %v3087_v54 = vpop.xlane.xlu0 %3086 }
0x20f9   : > { %v3088_v53 = vmul.f32 0.03125, %v3087_v54 }
0x20fb   : > { %v3089_v55 = vsub.f32 %v3082_v50, %v3088_v53 }
0x20fd   : > { %v3090_v60 = vmul.f32 %v3089_v55, %v3089_v55 }
0x20ff   : > { %v3091_v61 = vsel %vm796_vm2, %v3090_v60, 0.0 }
0x2100   : > { %3092 = vadd.xlane.f32.xlu0 %v3091_v61 }
0x218d   : > { %v3093_v0 = vpop.xlane.xlu0 %3092 }
0x218e   : > { %v3094_v5 = vmul.f32 0.03125, %v3093_v0 }
0x2190   : > { %v3095_v6 = vadd.f32 1e-05, %v3094_v5 }
0x2192   : > { %3926 = vrsqrt.f32 %v3095_v6 }
0x219c   : > { %v3927_v56 = vpop.eup %3926 }
0x219d   : > { %v3097_v46 = vmul.f32 %v3927_v56, %v3089_v55 }
0x219f   : > { %v3102_v14 = vmul.f32 %v3346_v7, %v3097_v46 }
0x21a1   : > { %v3107_v15 = vadd.f32 %v3347_v58, %v3102_v14 }
0x21a3   : > { %v3108_v16 = vpack.c.bf16 %v3107_v15, %v3107_v15 }
0x21a5   : > { %3352 = vmatmul.mubr.msk.bf16.vlgmr.msra.gmra.mrb[60].mxu1 %vm796_vm2, %v3108_v16 }
0x2278   : > { %v3170_v18 = vpop.f32.mrb[60].mxu1 }
0x2279   : > { %3177 = vst [vmem:[%s653_s29] sm:$0xff] %v3170_v18  ;;  %v3172_v57 = vpop.f32.mrb[61].mxu1 }
0x227a   : > { %3178 = vst [vmem:[%s653_s29 + $0x8] sm:$0xff] %v3172_v57  ;;  %v3174_v21 = vpop.f32.mrb[62].mxu1 }
0x227b   : > { %v3175_v22 = vpop.f32.mrb[63].mxu1 }
0x227c PF: > { %s4805_s23 = sld [smem:[#allocation2_spill]] }
0x2282   : > { %s31_s2 = sadd.s32 1, %s4805_s23  }
0x2283   : > { %p28_p4 = scmp.ge.s32.totalorder %s31_s2, 4  }
0x2285   :  { %30 = sbr.rel (!%p28_p4) target bundleno = 7 (0x7), region = 143 }

</bundles_post_ra>
